<compile_context>
chip_gen: v7x
topology: tpu7x:2x2x1
jax: 0.10.0
libtpu: 0.0.40
codegen_flags: <defaults>
</compile_context>

<pallas_src>
import functools
import jax
import jax.numpy as jnp
from jax.experimental import pallas as pl
from jax.experimental.pallas import tpu as pltpu


def _decoder_kernel(num_layers, steps, H, *refs):
    """refs = [z, wz, bz, (wih_l, whh_l, b_l) * L, h0, c0, wproj, bproj, out, hs_scratch]."""
    z_ref, wz_ref, bz_ref = refs[0], refs[1], refs[2]
    layer_refs = refs[3:3 + 3 * num_layers]
    h0_ref, c0_ref, wproj_ref, bproj_ref, out_ref, hs_ref = refs[3 + 3 * num_layers:]

    B = z_ref.shape[0]
    f32, bf16 = jnp.float32, jnp.bfloat16
    H3, H4 = 3 * H, 4 * H

    # z2emb, computed once (the LSTM input is input_z.repeat([1, steps, 1]) -> time-invariant).
    x_emb = (jnp.dot(z_ref[...].astype(bf16), wz_ref[...], preferred_element_type=f32)
             + bz_ref[...])

    wih = [layer_refs[3 * l][...] for l in range(num_layers)]        # bf16 (in_dim, 4H)
    whh = [layer_refs[3 * l + 1][...] for l in range(num_layers)]    # bf16 (H, 4H)
    # Hoist bias broadcasts out of the unrolled time loop.
    bias = [jnp.broadcast_to(layer_refs[3 * l + 2][...], (B, H4)) for l in range(num_layers)]

    # Hoisted time-invariant layer-0 input projection (includes both pre-summed LSTM biases).
    pre0 = jnp.dot(x_emb.astype(bf16), wih[0], preferred_element_type=f32) + bias[0]

    h = [h0_ref[l] for l in range(num_layers)]   # f32 (B, H)
    c = [c0_ref[l] for l in range(num_layers)]   # f32 (B, H)

    def lstm_cell(gates, c_prev):
        # Gate columns were permuted host-side to [i, f, o, g]:
        # one sigmoid on the first 3H lanes, one tanh on the last H lanes (2 EUP dispatches, not 4).
        sig = jax.nn.sigmoid(gates[:, :H3])
        g_g = jnp.tanh(gates[:, H3:])
        i_g, f_g, o_g = sig[:, :H], sig[:, H:2 * H], sig[:, 2 * H:H3]
        c_new = f_g * c_prev + i_g * g_g
        h_new = o_g * jnp.tanh(c_new)
        return h_new, c_new

    for t in range(steps):
        # Layer 0: only the recurrent matmul remains inside the loop.
        gates0 = pre0 + jnp.dot(h[0].astype(bf16), whh[0], preferred_element_type=f32)
        h[0], c[0] = lstm_cell(gates0, c[0])
        x = h[0]
        # Layers l>0: two small MXU matmuls accumulated into the same gates (no lane concat).
        for l in range(1, num_layers):
            gates = (jnp.dot(x.astype(bf16), wih[l], preferred_element_type=f32)
                     + jnp.dot(h[l].astype(bf16), whh[l], preferred_element_type=f32)
                     + bias[l])
            h[l], c[l] = lstm_cell(gates, c[l])
            x = h[l]
        # Park the last-layer hidden state at its final b-major location (static offset under unroll).
        hs_ref[:, pl.ds(t, 1), :] = x[:, None, :]

    # self.drop(output): dropout is identity in eval mode.
    # Single batched vocab projection; rows are already in PyTorch's (b*steps + t) order.
    flat = hs_ref[...].reshape(B * steps, H)
    logits = (jnp.dot(flat.astype(bf16), wproj_ref[...], preferred_element_type=f32)
              + bproj_ref[...])
    out_ref[...] = logits.astype(out_ref.dtype)


def _permute_gates_ifog(w):
    """Reorder the 4H gate columns from PyTorch's [i, f, g, o] to [i, f, o, g] (last axis)."""
    Hg = w.shape[-1] // 4
    return jnp.concatenate([w[..., :2 * Hg], w[..., 3 * Hg:], w[..., 2 * Hg:3 * Hg]], axis=-1)


def text_decoder_forward(z, h0, c0, params, steps):
    """Runs the TextDecoder forward pass; returns logits of shape (B*steps, vocab)."""
    B, _ = z.shape
    num_layers, _, H = h0.shape
    vocab = params["wproj"].shape[1]
    bf16 = jnp.bfloat16

    # Weights -> bf16 (native MXU input); biases / state / accumulation stay f32.
    inputs = [z, params["wz"].astype(bf16), params["bz"]]
    for l in range(num_layers):
        inputs += [
            _permute_gates_ifog(params["wih"][l]).astype(bf16),
            _permute_gates_ifog(params["whh"][l]).astype(bf16),
            _permute_gates_ifog(params["bih"][l] + params["bhh"][l]),   # pre-summed biases, f32
        ]
    inputs += [h0, c0, params["wproj"].astype(bf16), params["bproj"]]

    vmem = lambda: pl.BlockSpec(memory_space=pltpu.MemorySpace.VMEM)
    return pl.pallas_call(
        functools.partial(_decoder_kernel, num_layers, steps, H),
        out_shape=jax.ShapeDtypeStruct((B * steps, vocab), jnp.float32),
        in_specs=[vmem() for _ in inputs],
        out_specs=vmem(),
        scratch_shapes=[pltpu.VMEM((B, steps, H), jnp.float32)],
    )(*inputs)


def _reference(z, h0, c0, params, steps):
    """Pure-JAX f32 reference with PyTorch LSTM semantics (gate order [i, f, g, o])."""
    num_layers, _, H = h0.shape
    x_emb = z @ params["wz"] + params["bz"][0]
    h, c = h0, c0
    outs = []
    for _ in range(steps):
        x = x_emb
        new_h, new_c = [], []
        for l in range(num_layers):
            gates = (x @ params["wih"][l] + params["bih"][l][0]
                     + h[l] @ params["whh"][l] + params["bhh"][l][0])
            i_g = jax.nn.sigmoid(gates[:, 0:H])
            f_g = jax.nn.sigmoid(gates[:, H:2 * H])
            g_g = jnp.tanh(gates[:, 2 * H:3 * H])
            o_g = jax.nn.sigmoid(gates[:, 3 * H:4 * H])
            cc = f_g * c[l] + i_g * g_g
            hh = o_g * jnp.tanh(cc)
            new_h.append(hh)
            new_c.append(cc)
            x = hh
        h, c = jnp.stack(new_h), jnp.stack(new_c)
        outs.append(x @ params["wproj"] + params["bproj"][0])
    out = jnp.stack(outs, axis=1)  # (B, steps, vocab)
    return out.reshape(-1, out.shape[-1])


if __name__ == "__main__":
    # Small, forward-consistent sizes:
    #   args.dim_z=8, args.dim_emb=16, args.dim_h=16 (=> LSTM hidden 2*dim_h=32),
    #   args.num_layers=2, vocab.size=128, batch=2, steps=8.
    B, dim_z, dim_emb, dim_h, num_layers, vocab, steps = 2, 8, 16, 16, 2, 128, 8
    H = 2 * dim_h

    key = jax.random.PRNGKey(0)
    keys = jax.random.split(key, 8 + 4 * num_layers)
    k = iter(keys)

    scale = 0.1
    params = {
        "wz": scale * jax.random.normal(next(k), (dim_z, dim_emb), jnp.float32),
        "bz": scale * jax.random.normal(next(k), (1, dim_emb), jnp.float32),
        "wih": [], "whh": [], "bih": [], "bhh": [],
        "wproj": scale * jax.random.normal(next(k), (H, vocab), jnp.float32),
        "bproj": scale * jax.random.normal(next(k), (1, vocab), jnp.float32),
    }
    for l in range(num_layers):
        in_dim = dim_emb if l == 0 else H
        params["wih"].append(scale * jax.random.normal(next(k), (in_dim, 4 * H), jnp.float32))
        params["whh"].append(scale * jax.random.normal(next(k), (H, 4 * H), jnp.float32))
        params["bih"].append(scale * jax.random.normal(next(k), (1, 4 * H), jnp.float32))
        params["bhh"].append(scale * jax.random.normal(next(k), (1, 4 * H), jnp.float32))

    z = jax.random.normal(next(k), (B, dim_z), jnp.float32)
    h0 = scale * jax.random.normal(next(k), (num_layers, B, H), jnp.float32)
    c0 = scale * jax.random.normal(next(k), (num_layers, B, H), jnp.float32)

    # TODO(synk): nn.Dropout is active only in train mode; the kernel implements eval-mode (identity) dropout.
    logits = text_decoder_forward(z, h0, c0, params, steps)
    logits = jax.block_until_ready(logits)

    ref = _reference(z, h0, c0, params, steps)
    assert logits.shape == (B * steps, vocab), logits.shape
    # bf16 weights on the MXU path => loosen tolerance vs the f32 reference.
    err = float(jnp.max(jnp.abs(logits - ref)))
    assert jnp.allclose(logits, ref, rtol=2e-2, atol=2e-2), err

    print("KERNEL_OK")
</pallas_src>

<mosaic_0001>
module attributes {stable_mosaic.version = 11 : i64} {
  func.func @_decoder_kernel(%arg0: memref<2x8xf32, #tpu.memory_space<vmem>>, %arg1: memref<8x16xbf16, #tpu.memory_space<vmem>>, %arg2: memref<1x16xf32, #tpu.memory_space<vmem>>, %arg3: memref<16x128xbf16, #tpu.memory_space<vmem>>, %arg4: memref<32x128xbf16, #tpu.memory_space<vmem>>, %arg5: memref<1x128xf32, #tpu.memory_space<vmem>>, %arg6: memref<32x128xbf16, #tpu.memory_space<vmem>>, %arg7: memref<32x128xbf16, #tpu.memory_space<vmem>>, %arg8: memref<1x128xf32, #tpu.memory_space<vmem>>, %arg9: memref<2x2x32xf32, #tpu.memory_space<vmem>>, %arg10: memref<2x2x32xf32, #tpu.memory_space<vmem>>, %arg11: memref<32x128xbf16, #tpu.memory_space<vmem>>, %arg12: memref<1x128xf32, #tpu.memory_space<vmem>>, %arg13: memref<16x128xf32, #tpu.memory_space<vmem>>, %arg14: memref<2x8x32xf32, #tpu.memory_space<vmem>>) attributes {dimension_semantics = [], scalar_prefetch = 0 : i64, scratch_operands = 1 : i64, tpu.core_type = #tpu.core_type<tc>} {
    %c0 = arith.constant 0 : index
    %c0_0 = arith.constant 0 : index
    %0 = vector.load %arg0[%c0, %c0_0] : memref<2x8xf32, #tpu.memory_space<vmem>>, vector<2x8xf32>
    %1 = arith.truncf %0 : vector<2x8xf32> to vector<2x8xbf16>
    %c0_1 = arith.constant 0 : index
    %c0_2 = arith.constant 0 : index
    %2 = vector.load %arg1[%c0_1, %c0_2] : memref<8x16xbf16, #tpu.memory_space<vmem>>, vector<8x16xbf16>
    %cst = arith.constant dense<0.000000e+00> : vector<2x16xf32>
    %3 = tpu.matmul %1, %2, %cst {dimension_numbers = #tpu.dot_dimension_numbers<[1], [0], [0], [1], [0, 0, 1, 1], [], []>} : vector<2x8xbf16>, vector<8x16xbf16>, vector<2x16xf32> -> vector<2x16xf32>
    %c0_3 = arith.constant 0 : index
    %c0_4 = arith.constant 0 : index
    %4 = vector.load %arg2[%c0_3, %c0_4] : memref<1x16xf32, #tpu.memory_space<vmem>>, vector<1x16xf32>
    %5 = vector.broadcast %4 : vector<1x16xf32> to vector<2x16xf32>
    %6 = arith.addf %3, %5 : vector<2x16xf32>
    %c0_5 = arith.constant 0 : index
    %c0_6 = arith.constant 0 : index
    %7 = vector.load %arg3[%c0_5, %c0_6] : memref<16x128xbf16, #tpu.memory_space<vmem>>, vector<16x128xbf16>
    %c0_7 = arith.constant 0 : index
    %c0_8 = arith.constant 0 : index
    %8 = vector.load %arg6[%c0_7, %c0_8] : memref<32x128xbf16, #tpu.memory_space<vmem>>, vector<32x128xbf16>
    %c0_9 = arith.constant 0 : index
    %c0_10 = arith.constant 0 : index
    %9 = vector.load %arg4[%c0_9, %c0_10] : memref<32x128xbf16, #tpu.memory_space<vmem>>, vector<32x128xbf16>
    %c0_11 = arith.constant 0 : index
    %c0_12 = arith.constant 0 : index
    %10 = vector.load %arg7[%c0_11, %c0_12] : memref<32x128xbf16, #tpu.memory_space<vmem>>, vector<32x128xbf16>
    %c0_13 = arith.constant 0 : index
    %c0_14 = arith.constant 0 : index
    %11 = vector.load %arg5[%c0_13, %c0_14] : memref<1x128xf32, #tpu.memory_space<vmem>>, vector<1x128xf32>
    %12 = vector.shape_cast %11 : vector<1x128xf32> to vector<1x128xf32>
    %13 = vector.broadcast %12 : vector<1x128xf32> to vector<2x128xf32>
    %c0_15 = arith.constant 0 : index
    %c0_16 = arith.constant 0 : index
    %14 = vector.load %arg8[%c0_15, %c0_16] : memref<1x128xf32, #tpu.memory_space<vmem>>, vector<1x128xf32>
    %15 = vector.shape_cast %14 : vector<1x128xf32> to vector<1x128xf32>
    %16 = vector.broadcast %15 : vector<1x128xf32> to vector<2x128xf32>
    %17 = arith.truncf %6 : vector<2x16xf32> to vector<2x16xbf16>
    %cst_17 = arith.constant dense<0.000000e+00> : vector<2x128xf32>
    %18 = tpu.matmul %17, %7, %cst_17 {dimension_numbers = #tpu.dot_dimension_numbers<[1], [0], [0], [1], [0, 0, 1, 1], [], []>} : vector<2x16xbf16>, vector<16x128xbf16>, vector<2x128xf32> -> vector<2x128xf32>
    %19 = arith.addf %18, %13 : vector<2x128xf32>
    %c0_18 = arith.constant 0 : index
    %c0_19 = arith.constant 0 : index
    %c0_20 = arith.constant 0 : index
    %20 = vector.load %arg9[%c0_18, %c0_19, %c0_20] : memref<2x2x32xf32, #tpu.memory_space<vmem>>, vector<1x2x32xf32>
    %21 = vector.shape_cast %20 : vector<1x2x32xf32> to vector<2x32xf32>
    %c1 = arith.constant 1 : index
    %c0_21 = arith.constant 0 : index
    %c0_22 = arith.constant 0 : index
    %22 = vector.load %arg9[%c1, %c0_21, %c0_22] : memref<2x2x32xf32, #tpu.memory_space<vmem>>, vector<1x2x32xf32>
    %23 = vector.shape_cast %22 : vector<1x2x32xf32> to vector<2x32xf32>
    %c0_23 = arith.constant 0 : index
    %c0_24 = arith.constant 0 : index
    %c0_25 = arith.constant 0 : index
    %24 = vector.load %arg10[%c0_23, %c0_24, %c0_25] : memref<2x2x32xf32, #tpu.memory_space<vmem>>, vector<1x2x32xf32>
    %25 = vector.shape_cast %24 : vector<1x2x32xf32> to vector<2x32xf32>
    %c1_26 = arith.constant 1 : index
    %c0_27 = arith.constant 0 : index
    %c0_28 = arith.constant 0 : index
    %26 = vector.load %arg10[%c1_26, %c0_27, %c0_28] : memref<2x2x32xf32, #tpu.memory_space<vmem>>, vector<1x2x32xf32>
    %27 = vector.shape_cast %26 : vector<1x2x32xf32> to vector<2x32xf32>
    %28 = arith.truncf %21 : vector<2x32xf32> to vector<2x32xbf16>
    %cst_29 = arith.constant dense<0.000000e+00> : vector<2x128xf32>
    %29 = tpu.matmul %28, %9, %cst_29 {dimension_numbers = #tpu.dot_dimension_numbers<[1], [0], [0], [1], [0, 0, 1, 1], [], []>} : vector<2x32xbf16>, vector<32x128xbf16>, vector<2x128xf32> -> vector<2x128xf32>
    %30 = arith.addf %19, %29 : vector<2x128xf32>
    %31 = vector.extract_strided_slice %30 {offsets = [0, 0], sizes = [2, 96], strides = [1, 1]} : vector<2x128xf32> to vector<2x96xf32>
    %32 = arith.negf %31 : vector<2x96xf32>
    %33 = math.exp %32 : vector<2x96xf32>
    %cst_30 = arith.constant 1.000000e+00 : f32
    %34 = vector.broadcast %cst_30 : f32 to vector<2x96xf32>
    %35 = arith.addf %34, %33 : vector<2x96xf32>
    %36 = arith.divf %34, %35 : vector<2x96xf32>
    %37 = vector.extract_strided_slice %30 {offsets = [0, 96], sizes = [2, 32], strides = [1, 1]} : vector<2x128xf32> to vector<2x32xf32>
    %38 = math.tanh %37 : vector<2x32xf32>
    %39 = vector.extract_strided_slice %36 {offsets = [0, 0], sizes = [2, 32], strides = [1, 1]} : vector<2x96xf32> to vector<2x32xf32>
    %40 = vector.extract_strided_slice %36 {offsets = [0, 32], sizes = [2, 32], strides = [1, 1]} : vector<2x96xf32> to vector<2x32xf32>
    %41 = vector.extract_strided_slice %36 {offsets = [0, 64], sizes = [2, 32], strides = [1, 1]} : vector<2x96xf32> to vector<2x32xf32>
    %42 = arith.mulf %40, %25 : vector<2x32xf32>
    %43 = arith.mulf %39, %38 : vector<2x32xf32>
    %44 = arith.addf %42, %43 : vector<2x32xf32>
    %45 = math.tanh %44 : vector<2x32xf32>
    %46 = arith.mulf %41, %45 : vector<2x32xf32>
    %47 = arith.truncf %46 : vector<2x32xf32> to vector<2x32xbf16>
    %cst_31 = arith.constant dense<0.000000e+00> : vector<2x128xf32>
    %48 = tpu.matmul %47, %8, %cst_31 {dimension_numbers = #tpu.dot_dimension_numbers<[1], [0], [0], [1], [0, 0, 1, 1], [], []>} : vector<2x32xbf16>, vector<32x128xbf16>, vector<2x128xf32> -> vector<2x128xf32>
    %49 = arith.truncf %23 : vector<2x32xf32> to vector<2x32xbf16>
    %cst_32 = arith.constant dense<0.000000e+00> : vector<2x128xf32>
    %50 = tpu.matmul %49, %10, %cst_32 {dimension_numbers = #tpu.dot_dimension_numbers<[1], [0], [0], [1], [0, 0, 1, 1], [], []>} : vector<2x32xbf16>, vector<32x128xbf16>, vector<2x128xf32> -> vector<2x128xf32>
    %51 = arith.addf %48, %50 : vector<2x128xf32>
    %52 = arith.addf %51, %16 : vector<2x128xf32>
    %53 = vector.extract_strided_slice %52 {offsets = [0, 0], sizes = [2, 96], strides = [1, 1]} : vector<2x128xf32> to vector<2x96xf32>
    %54 = arith.negf %53 : vector<2x96xf32>
    %55 = math.exp %54 : vector<2x96xf32>
    %cst_33 = arith.constant 1.000000e+00 : f32
    %56 = vector.broadcast %cst_33 : f32 to vector<2x96xf32>
    %57 = arith.addf %56, %55 : vector<2x96xf32>
    %58 = arith.divf %56, %57 : vector<2x96xf32>
    %59 = vector.extract_strided_slice %52 {offsets = [0, 96], sizes = [2, 32], strides = [1, 1]} : vector<2x128xf32> to vector<2x32xf32>
    %60 = math.tanh %59 : vector<2x32xf32>
    %61 = vector.extract_strided_slice %58 {offsets = [0, 0], sizes = [2, 32], strides = [1, 1]} : vector<2x96xf32> to vector<2x32xf32>
    %62 = vector.extract_strided_slice %58 {offsets = [0, 32], sizes = [2, 32], strides = [1, 1]} : vector<2x96xf32> to vector<2x32xf32>
    %63 = vector.extract_strided_slice %58 {offsets = [0, 64], sizes = [2, 32], strides = [1, 1]} : vector<2x96xf32> to vector<2x32xf32>
    %64 = arith.mulf %62, %27 : vector<2x32xf32>
    %65 = arith.mulf %61, %60 : vector<2x32xf32>
    %66 = arith.addf %64, %65 : vector<2x32xf32>
    %67 = math.tanh %66 : vector<2x32xf32>
    %68 = arith.mulf %63, %67 : vector<2x32xf32>
    %69 = vector.shape_cast %68 : vector<2x32xf32> to vector<2x1x32xf32>
    %c0_34 = arith.constant 0 : index
    %c0_35 = arith.constant 0 : index
    %c0_36 = arith.constant 0 : index
    %70 = vector.load %arg14[%c0_34, %c0_35, %c0_36] : memref<2x8x32xf32, #tpu.memory_space<vmem>>, vector<2x1x32xf32>
    tpu.vector_store %arg14[%c0_34, %c0_35, %c0_36], %69 {strides = array<i32>} : memref<2x8x32xf32, #tpu.memory_space<vmem>>, vector<2x1x32xf32>,
    %71 = arith.truncf %46 : vector<2x32xf32> to vector<2x32xbf16>
    %cst_37 = arith.constant dense<0.000000e+00> : vector<2x128xf32>
    %72 = tpu.matmul %71, %9, %cst_37 {dimension_numbers = #tpu.dot_dimension_numbers<[1], [0], [0], [1], [0, 0, 1, 1], [], []>} : vector<2x32xbf16>, vector<32x128xbf16>, vector<2x128xf32> -> vector<2x128xf32>
    %73 = arith.addf %19, %72 : vector<2x128xf32>
    %74 = vector.extract_strided_slice %73 {offsets = [0, 0], sizes = [2, 96], strides = [1, 1]} : vector<2x128xf32> to vector<2x96xf32>
    %75 = arith.negf %74 : vector<2x96xf32>
    %76 = math.exp %75 : vector<2x96xf32>
    %cst_38 = arith.constant 1.000000e+00 : f32
    %77 = vector.broadcast %cst_38 : f32 to vector<2x96xf32>
    %78 = arith.addf %77, %76 : vector<2x96xf32>
    %79 = arith.divf %77, %78 : vector<2x96xf32>
    %80 = vector.extract_strided_slice %73 {offsets = [0, 96], sizes = [2, 32], strides = [1, 1]} : vector<2x128xf32> to vector<2x32xf32>
    %81 = math.tanh %80 : vector<2x32xf32>
    %82 = vector.extract_strided_slice %79 {offsets = [0, 0], sizes = [2, 32], strides = [1, 1]} : vector<2x96xf32> to vector<2x32xf32>
    %83 = vector.extract_strided_slice %79 {offsets = [0, 32], sizes = [2, 32], strides = [1, 1]} : vector<2x96xf32> to vector<2x32xf32>
    %84 = vector.extract_strided_slice %79 {offsets = [0, 64], sizes = [2, 32], strides = [1, 1]} : vector<2x96xf32> to vector<2x32xf32>
    %85 = arith.mulf %83, %44 : vector<2x32xf32>
    %86 = arith.mulf %82, %81 : vector<2x32xf32>
    %87 = arith.addf %85, %86 : vector<2x32xf32>
    %88 = math.tanh %87 : vector<2x32xf32>
    %89 = arith.mulf %84, %88 : vector<2x32xf32>
    %90 = arith.truncf %89 : vector<2x32xf32> to vector<2x32xbf16>
    %cst_39 = arith.constant dense<0.000000e+00> : vector<2x128xf32>
    %91 = tpu.matmul %90, %8, %cst_39 {dimension_numbers = #tpu.dot_dimension_numbers<[1], [0], [0], [1], [0, 0, 1, 1], [], []>} : vector<2x32xbf16>, vector<32x128xbf16>, vector<2x128xf32> -> vector<2x128xf32>
    %92 = arith.truncf %68 : vector<2x32xf32> to vector<2x32xbf16>
    %cst_40 = arith.constant dense<0.000000e+00> : vector<2x128xf32>
    %93 = tpu.matmul %92, %10, %cst_40 {dimension_numbers = #tpu.dot_dimension_numbers<[1], [0], [0], [1], [0, 0, 1, 1], [], []>} : vector<2x32xbf16>, vector<32x128xbf16>, vector<2x128xf32> -> vector<2x128xf32>
    %94 = arith.addf %91, %93 : vector<2x128xf32>
    %95 = arith.addf %94, %16 : vector<2x128xf32>
    %96 = vector.extract_strided_slice %95 {offsets = [0, 0], sizes = [2, 96], strides = [1, 1]} : vector<2x128xf32> to vector<2x96xf32>
    %97 = arith.negf %96 : vector<2x96xf32>
    %98 = math.exp %97 : vector<2x96xf32>
    %cst_41 = arith.constant 1.000000e+00 : f32
    %99 = vector.broadcast %cst_41 : f32 to vector<2x96xf32>
    %100 = arith.addf %99, %98 : vector<2x96xf32>
    %101 = arith.divf %99, %100 : vector<2x96xf32>
    %102 = vector.extract_strided_slice %95 {offsets = [0, 96], sizes = [2, 32], strides = [1, 1]} : vector<2x128xf32> to vector<2x32xf32>
    %103 = math.tanh %102 : vector<2x32xf32>
    %104 = vector.extract_strided_slice %101 {offsets = [0, 0], sizes = [2, 32], strides = [1, 1]} : vector<2x96xf32> to vector<2x32xf32>
    %105 = vector.extract_strided_slice %101 {offsets = [0, 32], sizes = [2, 32], strides = [1, 1]} : vector<2x96xf32> to vector<2x32xf32>
    %106 = vector.extract_strided_slice %101 {offsets = [0, 64], sizes = [2, 32], strides = [1, 1]} : vector<2x96xf32> to vector<2x32xf32>
    %107 = arith.mulf %105, %66 : vector<2x32xf32>
    %108 = arith.mulf %104, %103 : vector<2x32xf32>
    %109 = arith.addf %107, %108 : vector<2x32xf32>
    %110 = math.tanh %109 : vector<2x32xf32>
    %111 = arith.mulf %106, %110 : vector<2x32xf32>
    %112 = vector.shape_cast %111 : vector<2x32xf32> to vector<2x1x32xf32>
    %c0_42 = arith.constant 0 : index
    %c1_43 = arith.constant 1 : index
    %c0_44 = arith.constant 0 : index
    %113 = vector.load %arg14[%c0_42, %c1_43, %c0_44] : memref<2x8x32xf32, #tpu.memory_space<vmem>>, vector<2x1x32xf32>
    tpu.vector_store %arg14[%c0_42, %c1_43, %c0_44], %112 {strides = array<i32>} : memref<2x8x32xf32, #tpu.memory_space<vmem>>, vector<2x1x32xf32>,
    %114 = arith.truncf %89 : vector<2x32xf32> to vector<2x32xbf16>
    %cst_45 = arith.constant dense<0.000000e+00> : vector<2x128xf32>
    %115 = tpu.matmul %114, %9, %cst_45 {dimension_numbers = #tpu.dot_dimension_numbers<[1], [0], [0], [1], [0, 0, 1, 1], [], []>} : vector<2x32xbf16>, vector<32x128xbf16>, vector<2x128xf32> -> vector<2x128xf32>
    %116 = arith.addf %19, %115 : vector<2x128xf32>
    %117 = vector.extract_strided_slice %116 {offsets = [0, 0], sizes = [2, 96], strides = [1, 1]} : vector<2x128xf32> to vector<2x96xf32>
    %118 = arith.negf %117 : vector<2x96xf32>
    %119 = math.exp %118 : vector<2x96xf32>
    %cst_46 = arith.constant 1.000000e+00 : f32
    %120 = vector.broadcast %cst_46 : f32 to vector<2x96xf32>
    %121 = arith.addf %120, %119 : vector<2x96xf32>
    %122 = arith.divf %120, %121 : vector<2x96xf32>
    %123 = vector.extract_strided_slice %116 {offsets = [0, 96], sizes = [2, 32], strides = [1, 1]} : vector<2x128xf32> to vector<2x32xf32>
    %124 = math.tanh %123 : vector<2x32xf32>
    %125 = vector.extract_strided_slice %122 {offsets = [0, 0], sizes = [2, 32], strides = [1, 1]} : vector<2x96xf32> to vector<2x32xf32>
    %126 = vector.extract_strided_slice %122 {offsets = [0, 32], sizes = [2, 32], strides = [1, 1]} : vector<2x96xf32> to vector<2x32xf32>
    %127 = vector.extract_strided_slice %122 {offsets = [0, 64], sizes = [2, 32], strides = [1, 1]} : vector<2x96xf32> to vector<2x32xf32>
    %128 = arith.mulf %126, %87 : vector<2x32xf32>
    %129 = arith.mulf %125, %124 : vector<2x32xf32>
    %130 = arith.addf %128, %129 : vector<2x32xf32>
    %131 = math.tanh %130 : vector<2x32xf32>
    %132 = arith.mulf %127, %131 : vector<2x32xf32>
    %133 = arith.truncf %132 : vector<2x32xf32> to vector<2x32xbf16>
    %cst_47 = arith.constant dense<0.000000e+00> : vector<2x128xf32>
    %134 = tpu.matmul %133, %8, %cst_47 {dimension_numbers = #tpu.dot_dimension_numbers<[1], [0], [0], [1], [0, 0, 1, 1], [], []>} : vector<2x32xbf16>, vector<32x128xbf16>, vector<2x128xf32> -> vector<2x128xf32>
    %135 = arith.truncf %111 : vector<2x32xf32> to vector<2x32xbf16>
    %cst_48 = arith.constant dense<0.000000e+00> : vector<2x128xf32>
    %136 = tpu.matmul %135, %10, %cst_48 {dimension_numbers = #tpu.dot_dimension_numbers<[1], [0], [0], [1], [0, 0, 1, 1], [], []>} : vector<2x32xbf16>, vector<32x128xbf16>, vector<2x128xf32> -> vector<2x128xf32>
    %137 = arith.addf %134, %136 : vector<2x128xf32>
    %138 = arith.addf %137, %16 : vector<2x128xf32>
    %139 = vector.extract_strided_slice %138 {offsets = [0, 0], sizes = [2, 96], strides = [1, 1]} : vector<2x128xf32> to vector<2x96xf32>
    %140 = arith.negf %139 : vector<2x96xf32>
    %141 = math.exp %140 : vector<2x96xf32>
    %cst_49 = arith.constant 1.000000e+00 : f32
    %142 = vector.broadcast %cst_49 : f32 to vector<2x96xf32>
    %143 = arith.addf %142, %141 : vector<2x96xf32>
    %144 = arith.divf %142, %143 : vector<2x96xf32>
    %145 = vector.extract_strided_slice %138 {offsets = [0, 96], sizes = [2, 32], strides = [1, 1]} : vector<2x128xf32> to vector<2x32xf32>
    %146 = math.tanh %145 : vector<2x32xf32>
    %147 = vector.extract_strided_slice %144 {offsets = [0, 0], sizes = [2, 32], strides = [1, 1]} : vector<2x96xf32> to vector<2x32xf32>
    %148 = vector.extract_strided_slice %144 {offsets = [0, 32], sizes = [2, 32], strides = [1, 1]} : vector<2x96xf32> to vector<2x32xf32>
    %149 = vector.extract_strided_slice %144 {offsets = [0, 64], sizes = [2, 32], strides = [1, 1]} : vector<2x96xf32> to vector<2x32xf32>
    %150 = arith.mulf %148, %109 : vector<2x32xf32>
    %151 = arith.mulf %147, %146 : vector<2x32xf32>
    %152 = arith.addf %150, %151 : vector<2x32xf32>
    %153 = math.tanh %152 : vector<2x32xf32>
    %154 = arith.mulf %149, %153 : vector<2x32xf32>
    %155 = vector.shape_cast %154 : vector<2x32xf32> to vector<2x1x32xf32>
    %c0_50 = arith.constant 0 : index
    %c2 = arith.constant 2 : index
    %c0_51 = arith.constant 0 : index
    %156 = vector.load %arg14[%c0_50, %c2, %c0_51] : memref<2x8x32xf32, #tpu.memory_space<vmem>>, vector<2x1x32xf32>
    tpu.vector_store %arg14[%c0_50, %c2, %c0_51], %155 {strides = array<i32>} : memref<2x8x32xf32, #tpu.memory_space<vmem>>, vector<2x1x32xf32>,
    %157 = arith.truncf %132 : vector<2x32xf32> to vector<2x32xbf16>
    %cst_52 = arith.constant dense<0.000000e+00> : vector<2x128xf32>
    %158 = tpu.matmul %157, %9, %cst_52 {dimension_numbers = #tpu.dot_dimension_numbers<[1], [0], [0], [1], [0, 0, 1, 1], [], []>} : vector<2x32xbf16>, vector<32x128xbf16>, vector<2x128xf32> -> vector<2x128xf32>
    %159 = arith.addf %19, %158 : vector<2x128xf32>
    %160 = vector.extract_strided_slice %159 {offsets = [0, 0], sizes = [2, 96], strides = [1, 1]} : vector<2x128xf32> to vector<2x96xf32>
    %161 = arith.negf %160 : vector<2x96xf32>
    %162 = math.exp %161 : vector<2x96xf32>
    %cst_53 = arith.constant 1.000000e+00 : f32
    %163 = vector.broadcast %cst_53 : f32 to vector<2x96xf32>
    %164 = arith.addf %163, %162 : vector<2x96xf32>
    %165 = arith.divf %163, %164 : vector<2x96xf32>
    %166 = vector.extract_strided_slice %159 {offsets = [0, 96], sizes = [2, 32], strides = [1, 1]} : vector<2x128xf32> to vector<2x32xf32>
    %167 = math.tanh %166 : vector<2x32xf32>
    %168 = vector.extract_strided_slice %165 {offsets = [0, 0], sizes = [2, 32], strides = [1, 1]} : vector<2x96xf32> to vector<2x32xf32>
    %169 = vector.extract_strided_slice %165 {offsets = [0, 32], sizes = [2, 32], strides = [1, 1]} : vector<2x96xf32> to vector<2x32xf32>
    %170 = vector.extract_strided_slice %165 {offsets = [0, 64], sizes = [2, 32], strides = [1, 1]} : vector<2x96xf32> to vector<2x32xf32>
    %171 = arith.mulf %169, %130 : vector<2x32xf32>
    %172 = arith.mulf %168, %167 : vector<2x32xf32>
    %173 = arith.addf %171, %172 : vector<2x32xf32>
    %174 = math.tanh %173 : vector<2x32xf32>
    %175 = arith.mulf %170, %174 : vector<2x32xf32>
    %176 = arith.truncf %175 : vector<2x32xf32> to vector<2x32xbf16>
    %cst_54 = arith.constant dense<0.000000e+00> : vector<2x128xf32>
    %177 = tpu.matmul %176, %8, %cst_54 {dimension_numbers = #tpu.dot_dimension_numbers<[1], [0], [0], [1], [0, 0, 1, 1], [], []>} : vector<2x32xbf16>, vector<32x128xbf16>, vector<2x128xf32> -> vector<2x128xf32>
    %178 = arith.truncf %154 : vector<2x32xf32> to vector<2x32xbf16>
    %cst_55 = arith.constant dense<0.000000e+00> : vector<2x128xf32>
    %179 = tpu.matmul %178, %10, %cst_55 {dimension_numbers = #tpu.dot_dimension_numbers<[1], [0], [0], [1], [0, 0, 1, 1], [], []>} : vector<2x32xbf16>, vector<32x128xbf16>, vector<2x128xf32> -> vector<2x128xf32>
    %180 = arith.addf %177, %179 : vector<2x128xf32>
    %181 = arith.addf %180, %16 : vector<2x128xf32>
    %182 = vector.extract_strided_slice %181 {offsets = [0, 0], sizes = [2, 96], strides = [1, 1]} : vector<2x128xf32> to vector<2x96xf32>
    %183 = arith.negf %182 : vector<2x96xf32>
    %184 = math.exp %183 : vector<2x96xf32>
    %cst_56 = arith.constant 1.000000e+00 : f32
    %185 = vector.broadcast %cst_56 : f32 to vector<2x96xf32>
    %186 = arith.addf %185, %184 : vector<2x96xf32>
    %187 = arith.divf %185, %186 : vector<2x96xf32>
    %188 = vector.extract_strided_slice %181 {offsets = [0, 96], sizes = [2, 32], strides = [1, 1]} : vector<2x128xf32> to vector<2x32xf32>
    %189 = math.tanh %188 : vector<2x32xf32>
    %190 = vector.extract_strided_slice %187 {offsets = [0, 0], sizes = [2, 32], strides = [1, 1]} : vector<2x96xf32> to vector<2x32xf32>
    %191 = vector.extract_strided_slice %187 {offsets = [0, 32], sizes = [2, 32], strides = [1, 1]} : vector<2x96xf32> to vector<2x32xf32>
    %192 = vector.extract_strided_slice %187 {offsets = [0, 64], sizes = [2, 32], strides = [1, 1]} : vector<2x96xf32> to vector<2x32xf32>
    %193 = arith.mulf %191, %152 : vector<2x32xf32>
    %194 = arith.mulf %190, %189 : vector<2x32xf32>
    %195 = arith.addf %193, %194 : vector<2x32xf32>
    %196 = math.tanh %195 : vector<2x32xf32>
    %197 = arith.mulf %192, %196 : vector<2x32xf32>
    %198 = vector.shape_cast %197 : vector<2x32xf32> to vector<2x1x32xf32>
    %c0_57 = arith.constant 0 : index
    %c3 = arith.constant 3 : index
    %c0_58 = arith.constant 0 : index
    %199 = vector.load %arg14[%c0_57, %c3, %c0_58] : memref<2x8x32xf32, #tpu.memory_space<vmem>>, vector<2x1x32xf32>
    tpu.vector_store %arg14[%c0_57, %c3, %c0_58], %198 {strides = array<i32>} : memref<2x8x32xf32, #tpu.memory_space<vmem>>, vector<2x1x32xf32>,
    %200 = arith.truncf %175 : vector<2x32xf32> to vector<2x32xbf16>
    %cst_59 = arith.constant dense<0.000000e+00> : vector<2x128xf32>
    %201 = tpu.matmul %200, %9, %cst_59 {dimension_numbers = #tpu.dot_dimension_numbers<[1], [0], [0], [1], [0, 0, 1, 1], [], []>} : vector<2x32xbf16>, vector<32x128xbf16>, vector<2x128xf32> -> vector<2x128xf32>
    %202 = arith.addf %19, %201 : vector<2x128xf32>
    %203 = vector.extract_strided_slice %202 {offsets = [0, 0], sizes = [2, 96], strides = [1, 1]} : vector<2x128xf32> to vector<2x96xf32>
    %204 = arith.negf %203 : vector<2x96xf32>
    %205 = math.exp %204 : vector<2x96xf32>
    %cst_60 = arith.constant 1.000000e+00 : f32
    %206 = vector.broadcast %cst_60 : f32 to vector<2x96xf32>
    %207 = arith.addf %206, %205 : vector<2x96xf32>
    %208 = arith.divf %206, %207 : vector<2x96xf32>
    %209 = vector.extract_strided_slice %202 {offsets = [0, 96], sizes = [2, 32], strides = [1, 1]} : vector<2x128xf32> to vector<2x32xf32>
    %210 = math.tanh %209 : vector<2x32xf32>
    %211 = vector.extract_strided_slice %208 {offsets = [0, 0], sizes = [2, 32], strides = [1, 1]} : vector<2x96xf32> to vector<2x32xf32>
    %212 = vector.extract_strided_slice %208 {offsets = [0, 32], sizes = [2, 32], strides = [1, 1]} : vector<2x96xf32> to vector<2x32xf32>
    %213 = vector.extract_strided_slice %208 {offsets = [0, 64], sizes = [2, 32], strides = [1, 1]} : vector<2x96xf32> to vector<2x32xf32>
    %214 = arith.mulf %212, %173 : vector<2x32xf32>
    %215 = arith.mulf %211, %210 : vector<2x32xf32>
    %216 = arith.addf %214, %215 : vector<2x32xf32>
    %217 = math.tanh %216 : vector<2x32xf32>
    %218 = arith.mulf %213, %217 : vector<2x32xf32>
    %219 = arith.truncf %218 : vector<2x32xf32> to vector<2x32xbf16>
    %cst_61 = arith.constant dense<0.000000e+00> : vector<2x128xf32>
    %220 = tpu.matmul %219, %8, %cst_61 {dimension_numbers = #tpu.dot_dimension_numbers<[1], [0], [0], [1], [0, 0, 1, 1], [], []>} : vector<2x32xbf16>, vector<32x128xbf16>, vector<2x128xf32> -> vector<2x128xf32>
    %221 = arith.truncf %197 : vector<2x32xf32> to vector<2x32xbf16>
    %cst_62 = arith.constant dense<0.000000e+00> : vector<2x128xf32>
    %222 = tpu.matmul %221, %10, %cst_62 {dimension_numbers = #tpu.dot_dimension_numbers<[1], [0], [0], [1], [0, 0, 1, 1], [], []>} : vector<2x32xbf16>, vector<32x128xbf16>, vector<2x128xf32> -> vector<2x128xf32>
    %223 = arith.addf %220, %222 : vector<2x128xf32>
    %224 = arith.addf %223, %16 : vector<2x128xf32>
    %225 = vector.extract_strided_slice %224 {offsets = [0, 0], sizes = [2, 96], strides = [1, 1]} : vector<2x128xf32> to vector<2x96xf32>
    %226 = arith.negf %225 : vector<2x96xf32>
    %227 = math.exp %226 : vector<2x96xf32>
    %cst_63 = arith.constant 1.000000e+00 : f32
    %228 = vector.broadcast %cst_63 : f32 to vector<2x96xf32>
    %229 = arith.addf %228, %227 : vector<2x96xf32>
    %230 = arith.divf %228, %229 : vector<2x96xf32>
    %231 = vector.extract_strided_slice %224 {offsets = [0, 96], sizes = [2, 32], strides = [1, 1]} : vector<2x128xf32> to vector<2x32xf32>
    %232 = math.tanh %231 : vector<2x32xf32>
    %233 = vector.extract_strided_slice %230 {offsets = [0, 0], sizes = [2, 32], strides = [1, 1]} : vector<2x96xf32> to vector<2x32xf32>
    %234 = vector.extract_strided_slice %230 {offsets = [0, 32], sizes = [2, 32], strides = [1, 1]} : vector<2x96xf32> to vector<2x32xf32>
    %235 = vector.extract_strided_slice %230 {offsets = [0, 64], sizes = [2, 32], strides = [1, 1]} : vector<2x96xf32> to vector<2x32xf32>
    %236 = arith.mulf %234, %195 : vector<2x32xf32>
    %237 = arith.mulf %233, %232 : vector<2x32xf32>
    %238 = arith.addf %236, %237 : vector<2x32xf32>
    %239 = math.tanh %238 : vector<2x32xf32>
    %240 = arith.mulf %235, %239 : vector<2x32xf32>
    %241 = vector.shape_cast %240 : vector<2x32xf32> to vector<2x1x32xf32>
    %c0_64 = arith.constant 0 : index
    %c4 = arith.constant 4 : index
    %c0_65 = arith.constant 0 : index
    %242 = vector.load %arg14[%c0_64, %c4, %c0_65] : memref<2x8x32xf32, #tpu.memory_space<vmem>>, vector<2x1x32xf32>
    tpu.vector_store %arg14[%c0_64, %c4, %c0_65], %241 {strides = array<i32>} : memref<2x8x32xf32, #tpu.memory_space<vmem>>, vector<2x1x32xf32>,
    %243 = arith.truncf %218 : vector<2x32xf32> to vector<2x32xbf16>
    %cst_66 = arith.constant dense<0.000000e+00> : vector<2x128xf32>
    %244 = tpu.matmul %243, %9, %cst_66 {dimension_numbers = #tpu.dot_dimension_numbers<[1], [0], [0], [1], [0, 0, 1, 1], [], []>} : vector<2x32xbf16>, vector<32x128xbf16>, vector<2x128xf32> -> vector<2x128xf32>
    %245 = arith.addf %19, %244 : vector<2x128xf32>
    %246 = vector.extract_strided_slice %245 {offsets = [0, 0], sizes = [2, 96], strides = [1, 1]} : vector<2x128xf32> to vector<2x96xf32>
    %247 = arith.negf %246 : vector<2x96xf32>
    %248 = math.exp %247 : vector<2x96xf32>
    %cst_67 = arith.constant 1.000000e+00 : f32
    %249 = vector.broadcast %cst_67 : f32 to vector<2x96xf32>
    %250 = arith.addf %249, %248 : vector<2x96xf32>
    %251 = arith.divf %249, %250 : vector<2x96xf32>
    %252 = vector.extract_strided_slice %245 {offsets = [0, 96], sizes = [2, 32], strides = [1, 1]} : vector<2x128xf32> to vector<2x32xf32>
    %253 = math.tanh %252 : vector<2x32xf32>
    %254 = vector.extract_strided_slice %251 {offsets = [0, 0], sizes = [2, 32], strides = [1, 1]} : vector<2x96xf32> to vector<2x32xf32>
    %255 = vector.extract_strided_slice %251 {offsets = [0, 32], sizes = [2, 32], strides = [1, 1]} : vector<2x96xf32> to vector<2x32xf32>
    %256 = vector.extract_strided_slice %251 {offsets = [0, 64], sizes = [2, 32], strides = [1, 1]} : vector<2x96xf32> to vector<2x32xf32>
    %257 = arith.mulf %255, %216 : vector<2x32xf32>
    %258 = arith.mulf %254, %253 : vector<2x32xf32>
    %259 = arith.addf %257, %258 : vector<2x32xf32>
    %260 = math.tanh %259 : vector<2x32xf32>
    %261 = arith.mulf %256, %260 : vector<2x32xf32>
    %262 = arith.truncf %261 : vector<2x32xf32> to vector<2x32xbf16>
    %cst_68 = arith.constant dense<0.000000e+00> : vector<2x128xf32>
    %263 = tpu.matmul %262, %8, %cst_68 {dimension_numbers = #tpu.dot_dimension_numbers<[1], [0], [0], [1], [0, 0, 1, 1], [], []>} : vector<2x32xbf16>, vector<32x128xbf16>, vector<2x128xf32> -> vector<2x128xf32>
    %264 = arith.truncf %240 : vector<2x32xf32> to vector<2x32xbf16>
    %cst_69 = arith.constant dense<0.000000e+00> : vector<2x128xf32>
    %265 = tpu.matmul %264, %10, %cst_69 {dimension_numbers = #tpu.dot_dimension_numbers<[1], [0], [0], [1], [0, 0, 1, 1], [], []>} : vector<2x32xbf16>, vector<32x128xbf16>, vector<2x128xf32> -> vector<2x128xf32>
    %266 = arith.addf %263, %265 : vector<2x128xf32>
    %267 = arith.addf %266, %16 : vector<2x128xf32>
    %268 = vector.extract_strided_slice %267 {offsets = [0, 0], sizes = [2, 96], strides = [1, 1]} : vector<2x128xf32> to vector<2x96xf32>
    %269 = arith.negf %268 : vector<2x96xf32>
    %270 = math.exp %269 : vector<2x96xf32>
    %cst_70 = arith.constant 1.000000e+00 : f32
    %271 = vector.broadcast %cst_70 : f32 to vector<2x96xf32>
    %272 = arith.addf %271, %270 : vector<2x96xf32>
    %273 = arith.divf %271, %272 : vector<2x96xf32>
    %274 = vector.extract_strided_slice %267 {offsets = [0, 96], sizes = [2, 32], strides = [1, 1]} : vector<2x128xf32> to vector<2x32xf32>
    %275 = math.tanh %274 : vector<2x32xf32>
    %276 = vector.extract_strided_slice %273 {offsets = [0, 0], sizes = [2, 32], strides = [1, 1]} : vector<2x96xf32> to vector<2x32xf32>
    %277 = vector.extract_strided_slice %273 {offsets = [0, 32], sizes = [2, 32], strides = [1, 1]} : vector<2x96xf32> to vector<2x32xf32>
    %278 = vector.extract_strided_slice %273 {offsets = [0, 64], sizes = [2, 32], strides = [1, 1]} : vector<2x96xf32> to vector<2x32xf32>
    %279 = arith.mulf %277, %238 : vector<2x32xf32>
    %280 = arith.mulf %276, %275 : vector<2x32xf32>
    %281 = arith.addf %279, %280 : vector<2x32xf32>
    %282 = math.tanh %281 : vector<2x32xf32>
    %283 = arith.mulf %278, %282 : vector<2x32xf32>
    %284 = vector.shape_cast %283 : vector<2x32xf32> to vector<2x1x32xf32>
    %c0_71 = arith.constant 0 : index
    %c5 = arith.constant 5 : index
    %c0_72 = arith.constant 0 : index
    %285 = vector.load %arg14[%c0_71, %c5, %c0_72] : memref<2x8x32xf32, #tpu.memory_space<vmem>>, vector<2x1x32xf32>
    tpu.vector_store %arg14[%c0_71, %c5, %c0_72], %284 {strides = array<i32>} : memref<2x8x32xf32, #tpu.memory_space<vmem>>, vector<2x1x32xf32>,
    %286 = arith.truncf %261 : vector<2x32xf32> to vector<2x32xbf16>
    %cst_73 = arith.constant dense<0.000000e+00> : vector<2x128xf32>
    %287 = tpu.matmul %286, %9, %cst_73 {dimension_numbers = #tpu.dot_dimension_numbers<[1], [0], [0], [1], [0, 0, 1, 1], [], []>} : vector<2x32xbf16>, vector<32x128xbf16>, vector<2x128xf32> -> vector<2x128xf32>
    %288 = arith.addf %19, %287 : vector<2x128xf32>
    %289 = vector.extract_strided_slice %288 {offsets = [0, 0], sizes = [2, 96], strides = [1, 1]} : vector<2x128xf32> to vector<2x96xf32>
    %290 = arith.negf %289 : vector<2x96xf32>
    %291 = math.exp %290 : vector<2x96xf32>
    %cst_74 = arith.constant 1.000000e+00 : f32
    %292 = vector.broadcast %cst_74 : f32 to vector<2x96xf32>
    %293 = arith.addf %292, %291 : vector<2x96xf32>
    %294 = arith.divf %292, %293 : vector<2x96xf32>
    %295 = vector.extract_strided_slice %288 {offsets = [0, 96], sizes = [2, 32], strides = [1, 1]} : vector<2x128xf32> to vector<2x32xf32>
    %296 = math.tanh %295 : vector<2x32xf32>
    %297 = vector.extract_strided_slice %294 {offsets = [0, 0], sizes = [2, 32], strides = [1, 1]} : vector<2x96xf32> to vector<2x32xf32>
    %298 = vector.extract_strided_slice %294 {offsets = [0, 32], sizes = [2, 32], strides = [1, 1]} : vector<2x96xf32> to vector<2x32xf32>
    %299 = vector.extract_strided_slice %294 {offsets = [0, 64], sizes = [2, 32], strides = [1, 1]} : vector<2x96xf32> to vector<2x32xf32>
    %300 = arith.mulf %298, %259 : vector<2x32xf32>
    %301 = arith.mulf %297, %296 : vector<2x32xf32>
    %302 = arith.addf %300, %301 : vector<2x32xf32>
    %303 = math.tanh %302 : vector<2x32xf32>
    %304 = arith.mulf %299, %303 : vector<2x32xf32>
    %305 = arith.truncf %304 : vector<2x32xf32> to vector<2x32xbf16>
    %cst_75 = arith.constant dense<0.000000e+00> : vector<2x128xf32>
    %306 = tpu.matmul %305, %8, %cst_75 {dimension_numbers = #tpu.dot_dimension_numbers<[1], [0], [0], [1], [0, 0, 1, 1], [], []>} : vector<2x32xbf16>, vector<32x128xbf16>, vector<2x128xf32> -> vector<2x128xf32>
    %307 = arith.truncf %283 : vector<2x32xf32> to vector<2x32xbf16>
    %cst_76 = arith.constant dense<0.000000e+00> : vector<2x128xf32>
    %308 = tpu.matmul %307, %10, %cst_76 {dimension_numbers = #tpu.dot_dimension_numbers<[1], [0], [0], [1], [0, 0, 1, 1], [], []>} : vector<2x32xbf16>, vector<32x128xbf16>, vector<2x128xf32> -> vector<2x128xf32>
    %309 = arith.addf %306, %308 : vector<2x128xf32>
    %310 = arith.addf %309, %16 : vector<2x128xf32>
    %311 = vector.extract_strided_slice %310 {offsets = [0, 0], sizes = [2, 96], strides = [1, 1]} : vector<2x128xf32> to vector<2x96xf32>
    %312 = arith.negf %311 : vector<2x96xf32>
    %313 = math.exp %312 : vector<2x96xf32>
    %cst_77 = arith.constant 1.000000e+00 : f32
    %314 = vector.broadcast %cst_77 : f32 to vector<2x96xf32>
    %315 = arith.addf %314, %313 : vector<2x96xf32>
    %316 = arith.divf %314, %315 : vector<2x96xf32>
    %317 = vector.extract_strided_slice %310 {offsets = [0, 96], sizes = [2, 32], strides = [1, 1]} : vector<2x128xf32> to vector<2x32xf32>
    %318 = math.tanh %317 : vector<2x32xf32>
    %319 = vector.extract_strided_slice %316 {offsets = [0, 0], sizes = [2, 32], strides = [1, 1]} : vector<2x96xf32> to vector<2x32xf32>
    %320 = vector.extract_strided_slice %316 {offsets = [0, 32], sizes = [2, 32], strides = [1, 1]} : vector<2x96xf32> to vector<2x32xf32>
    %321 = vector.extract_strided_slice %316 {offsets = [0, 64], sizes = [2, 32], strides = [1, 1]} : vector<2x96xf32> to vector<2x32xf32>
    %322 = arith.mulf %320, %281 : vector<2x32xf32>
    %323 = arith.mulf %319, %318 : vector<2x32xf32>
    %324 = arith.addf %322, %323 : vector<2x32xf32>
    %325 = math.tanh %324 : vector<2x32xf32>
    %326 = arith.mulf %321, %325 : vector<2x32xf32>
    %327 = vector.shape_cast %326 : vector<2x32xf32> to vector<2x1x32xf32>
    %c0_78 = arith.constant 0 : index
    %c6 = arith.constant 6 : index
    %c0_79 = arith.constant 0 : index
    %328 = vector.load %arg14[%c0_78, %c6, %c0_79] : memref<2x8x32xf32, #tpu.memory_space<vmem>>, vector<2x1x32xf32>
    tpu.vector_store %arg14[%c0_78, %c6, %c0_79], %327 {strides = array<i32>} : memref<2x8x32xf32, #tpu.memory_space<vmem>>, vector<2x1x32xf32>,
    %329 = arith.truncf %304 : vector<2x32xf32> to vector<2x32xbf16>
    %cst_80 = arith.constant dense<0.000000e+00> : vector<2x128xf32>
    %330 = tpu.matmul %329, %9, %cst_80 {dimension_numbers = #tpu.dot_dimension_numbers<[1], [0], [0], [1], [0, 0, 1, 1], [], []>} : vector<2x32xbf16>, vector<32x128xbf16>, vector<2x128xf32> -> vector<2x128xf32>
    %331 = arith.addf %19, %330 : vector<2x128xf32>
    %332 = vector.extract_strided_slice %331 {offsets = [0, 0], sizes = [2, 96], strides = [1, 1]} : vector<2x128xf32> to vector<2x96xf32>
    %333 = arith.negf %332 : vector<2x96xf32>
    %334 = math.exp %333 : vector<2x96xf32>
    %cst_81 = arith.constant 1.000000e+00 : f32
    %335 = vector.broadcast %cst_81 : f32 to vector<2x96xf32>
    %336 = arith.addf %335, %334 : vector<2x96xf32>
    %337 = arith.divf %335, %336 : vector<2x96xf32>
    %338 = vector.extract_strided_slice %331 {offsets = [0, 96], sizes = [2, 32], strides = [1, 1]} : vector<2x128xf32> to vector<2x32xf32>
    %339 = math.tanh %338 : vector<2x32xf32>
    %340 = vector.extract_strided_slice %337 {offsets = [0, 0], sizes = [2, 32], strides = [1, 1]} : vector<2x96xf32> to vector<2x32xf32>
    %341 = vector.extract_strided_slice %337 {offsets = [0, 32], sizes = [2, 32], strides = [1, 1]} : vector<2x96xf32> to vector<2x32xf32>
    %342 = vector.extract_strided_slice %337 {offsets = [0, 64], sizes = [2, 32], strides = [1, 1]} : vector<2x96xf32> to vector<2x32xf32>
    %343 = arith.mulf %341, %302 : vector<2x32xf32>
    %344 = arith.mulf %340, %339 : vector<2x32xf32>
    %345 = arith.addf %343, %344 : vector<2x32xf32>
    %346 = math.tanh %345 : vector<2x32xf32>
    %347 = arith.mulf %342, %346 : vector<2x32xf32>
    %348 = arith.truncf %347 : vector<2x32xf32> to vector<2x32xbf16>
    %cst_82 = arith.constant dense<0.000000e+00> : vector<2x128xf32>
    %349 = tpu.matmul %348, %8, %cst_82 {dimension_numbers = #tpu.dot_dimension_numbers<[1], [0], [0], [1], [0, 0, 1, 1], [], []>} : vector<2x32xbf16>, vector<32x128xbf16>, vector<2x128xf32> -> vector<2x128xf32>
    %350 = arith.truncf %326 : vector<2x32xf32> to vector<2x32xbf16>
    %cst_83 = arith.constant dense<0.000000e+00> : vector<2x128xf32>
    %351 = tpu.matmul %350, %10, %cst_83 {dimension_numbers = #tpu.dot_dimension_numbers<[1], [0], [0], [1], [0, 0, 1, 1], [], []>} : vector<2x32xbf16>, vector<32x128xbf16>, vector<2x128xf32> -> vector<2x128xf32>
    %352 = arith.addf %349, %351 : vector<2x128xf32>
    %353 = arith.addf %352, %16 : vector<2x128xf32>
    %354 = vector.extract_strided_slice %353 {offsets = [0, 0], sizes = [2, 96], strides = [1, 1]} : vector<2x128xf32> to vector<2x96xf32>
    %355 = arith.negf %354 : vector<2x96xf32>
    %356 = math.exp %355 : vector<2x96xf32>
    %cst_84 = arith.constant 1.000000e+00 : f32
    %357 = vector.broadcast %cst_84 : f32 to vector<2x96xf32>
    %358 = arith.addf %357, %356 : vector<2x96xf32>
    %359 = arith.divf %357, %358 : vector<2x96xf32>
    %360 = vector.extract_strided_slice %353 {offsets = [0, 96], sizes = [2, 32], strides = [1, 1]} : vector<2x128xf32> to vector<2x32xf32>
    %361 = math.tanh %360 : vector<2x32xf32>
    %362 = vector.extract_strided_slice %359 {offsets = [0, 0], sizes = [2, 32], strides = [1, 1]} : vector<2x96xf32> to vector<2x32xf32>
    %363 = vector.extract_strided_slice %359 {offsets = [0, 32], sizes = [2, 32], strides = [1, 1]} : vector<2x96xf32> to vector<2x32xf32>
    %364 = vector.extract_strided_slice %359 {offsets = [0, 64], sizes = [2, 32], strides = [1, 1]} : vector<2x96xf32> to vector<2x32xf32>
    %365 = arith.mulf %363, %324 : vector<2x32xf32>
    %366 = arith.mulf %362, %361 : vector<2x32xf32>
    %367 = arith.addf %365, %366 : vector<2x32xf32>
    %368 = math.tanh %367 : vector<2x32xf32>
    %369 = arith.mulf %364, %368 : vector<2x32xf32>
    %370 = vector.shape_cast %369 : vector<2x32xf32> to vector<2x1x32xf32>
    %c0_85 = arith.constant 0 : index
    %c7 = arith.constant 7 : index
    %c0_86 = arith.constant 0 : index
    %371 = vector.load %arg14[%c0_85, %c7, %c0_86] : memref<2x8x32xf32, #tpu.memory_space<vmem>>, vector<2x1x32xf32>
    tpu.vector_store %arg14[%c0_85, %c7, %c0_86], %370 {strides = array<i32>} : memref<2x8x32xf32, #tpu.memory_space<vmem>>, vector<2x1x32xf32>,
    %c0_87 = arith.constant 0 : index
    %c0_88 = arith.constant 0 : index
    %c0_89 = arith.constant 0 : index
    %372 = vector.load %arg14[%c0_87, %c0_88, %c0_89] : memref<2x8x32xf32, #tpu.memory_space<vmem>>, vector<2x8x32xf32>
    %373 = vector.shape_cast %372 : vector<2x8x32xf32> to vector<16x32xf32>
    %374 = arith.truncf %373 : vector<16x32xf32> to vector<16x32xbf16>
    %c0_90 = arith.constant 0 : index
    %c0_91 = arith.constant 0 : index
    %375 = vector.load %arg11[%c0_90, %c0_91] : memref<32x128xbf16, #tpu.memory_space<vmem>>, vector<32x128xbf16>
    %cst_92 = arith.constant dense<0.000000e+00> : vector<16x128xf32>
    %376 = tpu.matmul %374, %375, %cst_92 {dimension_numbers = #tpu.dot_dimension_numbers<[1], [0], [0], [1], [0, 0, 1, 1], [], []>} : vector<16x32xbf16>, vector<32x128xbf16>, vector<16x128xf32> -> vector<16x128xf32>
    %c0_93 = arith.constant 0 : index
    %c0_94 = arith.constant 0 : index
    %377 = vector.load %arg12[%c0_93, %c0_94] : memref<1x128xf32, #tpu.memory_space<vmem>>, vector<1x128xf32>
    %378 = vector.broadcast %377 : vector<1x128xf32> to vector<16x128xf32>
    %379 = arith.addf %376, %378 : vector<16x128xf32>
    %c0_95 = arith.constant 0 : index
    %c0_96 = arith.constant 0 : index
    %380 = vector.load %arg13[%c0_95, %c0_96] : memref<16x128xf32, #tpu.memory_space<vmem>>, vector<16x128xf32>
    tpu.vector_store %arg13[%c0_95, %c0_96], %379 {strides = array<i32>} : memref<16x128xf32, #tpu.memory_space<vmem>>, vector<16x128xf32>,
    return
  }
}

</mosaic_0001>

<bundles_post_ra>
// kernel: tpu_custom_call.1
= control target key start
LH: loop header
LB: loop body
LE: loop exit
PB: predicated region body
PF: predicated region fallthrough
CT: control target
= control target key end

     0   :  { %18 = vsyncpa [#allocation4], 0  ;;  %s3601_s0 = inlined_call_operand.hbm [shape: f32[2,8], index: 0, kind: input, shape index: {}]   ;;  %s3602_s1 = inlined_call_operand.hbm [shape: bf16[8,16], index: 1, kind: input, shape index: {}]   ;;  %s3603_s2 = inlined_call_operand.vmem [shape: f32[1,16], index: 2, kind: input, shape index: {}]   ;;  %s3604_s3 = inlined_call_operand.hbm [shape: bf16[16,128], index: 3, kind: input, shape index: {}]   ;;  %s3605_s4 = inlined_call_operand.hbm [shape: bf16[32,128], index: 4, kind: input, shape index: {}]   ;;  %s3606_s5 = inlined_call_operand.hbm [shape: f32[1,128], index: 5, kind: input, shape index: {}]   ;;  %s3607_s6 = inlined_call_operand.vmem [shape: bf16[32,128], index: 6, kind: input, shape index: {}]   ;;  %s3608_s7 = inlined_call_operand.hbm [shape: bf16[32,128], index: 7, kind: input, shape index: {}]   ;;  %s3609_s8 = inlined_call_operand.hbm [shape: f32[1,128], index: 8, kind: input, shape index: {}]   ;;  %s3610_s9 = inlined_call_operand.hbm [shape: f32[2,2,32], index: 9, kind: input, shape index: {}]   ;;  %s3611_s10 = inlined_call_operand.vmem [shape: f32[2,2,32], index: 10, kind: input, shape index: {}]   ;;  %s3612_s11 = inlined_call_operand.vmem [shape: bf16[32,128], index: 11, kind: input, shape index: {}]   ;;  %s3613_s12 = inlined_call_operand.vmem [shape: f32[1,128], index: 12, kind: input, shape index: {}]   ;;  %s3614_s13 = inlined_call_operand.hbm [shape: f32[16,128], index: 13, kind: output, shape index: {}]  }
   0x1   :  { %19 = vsyncpa [#allocation7], 0 }
   0x2   :  { %20 = vsyncpa [#allocation10], 0 }
   0x3   :  { %21 = vsyncpa [#allocation13], 0 }
   0x4   :  { %22 = vsyncpa [#allocation16], 0 }
   0x5   :  { %23 = vsyncpa [#allocation5], 0  ;;  %s2930_s25 = smov [#allocation6]   ;;  %s2720_s29 = scalar_lea.hbm %s3602_s1, 64 }
   0x6   :  { %s40_s26 = sshll.u32 %s2930_s25, 4  ;;  %p2721_p0 = scmp.ne.s32.totalorder %s3602_s1, %s2720_s29  ;;  %s41_s26 = int_to_ptr.vmem [resolvable:$true] %s40_s26 }
   0x7   :  { %p2724_p1 = scmp.lt.u32.totalorder %s2720_s29, %s3602_s1 }
   0x9   :  { %p2726_p2 = pnand %p2724_p1, %p2721_p0 }
   0xb   :  { %2729 = shalt.err (!%p2726_p2)
}
   0xc   :  { %s2730_s17 = scalar_lea.vmem %s41_s26, 64  ;;  %p2735_p4 = scmp.lt.s32.totalorder %s41_s26, %s41_s26 }
   0xd   :  { %p2731_p3 = scmp.ne.s32.totalorder %s41_s26, %s2730_s17  ;;  %p2736_p5 = scmp.lt.s32.totalorder %s2730_s17, %s2730_s17 }
   0xf   :  { %p2737_p6 = por %p2736_p5, %p2735_p4 }
  0x11   :  { %p2738_p7 = pnand %p2737_p6, %p2731_p3 }
  0x13   :  { %2741 = shalt.err (!%p2738_p7)
}
  0x14   :  { %43 = dma.hbm_to_vmem [thread:$0]  %s3602_s1, 64, %s41_s26, [#allocation7]  }
  0x15   :  { %s2931_s20 = smov [#allocation9]   ;;  %s2932_s22 = smov [#allocation12]  }
  0x16   :  { %s63_s21 = sshll.u32 %s2931_s20, 4  ;;  %s87_s23 = sshll.u32 %s2932_s22, 4  ;;  %s64_s21 = int_to_ptr.vmem [resolvable:$true] %s63_s21  ;;  %s88_s23 = int_to_ptr.vmem [resolvable:$true] %s87_s23 }
  0x17   :  { %s2742_s27 = scalar_lea.hbm %s3605_s4, 256 }
  0x18   :  { %p2743_p8 = scmp.ne.s32.totalorder %s3605_s4, %s2742_s27  ;;  %p2746_p9 = scmp.lt.u32.totalorder %s2742_s27, %s3605_s4 }
  0x1a   :  { %p2748_p10 = pnand %p2746_p9, %p2743_p8 }
  0x1c   :  { %2751 = shalt.err (!%p2748_p10)
}
  0x1d   :  { %s2752_s1 = scalar_lea.vmem %s64_s21, 256  ;;  %p2757_p12 = scmp.lt.s32.totalorder %s64_s21, %s64_s21 }
  0x1e   :  { %p2753_p11 = scmp.ne.s32.totalorder %s64_s21, %s2752_s1  ;;  %p2758_p13 = scmp.lt.s32.totalorder %s2752_s1, %s2752_s1 }
  0x20   :  { %p2759_p0 = por %p2758_p13, %p2757_p12 }
  0x22   :  { %p2760_p1 = pnand %p2759_p0, %p2753_p11 }
  0x24   :  { %2763 = shalt.err (!%p2760_p1)
}
  0x25   :  { %s2933_s26 = smov 64   ;;  %s2934_s15 = smov 4  }
  0x26   :  { %69 = dma.hbm_to_vmem [thread:$0]  %s3605_s4, 256, %s64_s21, [#allocation10], %s2933_s26, %s2933_s26, %s2934_s15  }
  0x27   :  { %s2764_s20 = scalar_lea.hbm %s3608_s7, 256 }
  0x28   :  { %p2765_p2 = scmp.ne.s32.totalorder %s3608_s7, %s2764_s20  ;;  %p2768_p3 = scmp.lt.u32.totalorder %s2764_s20, %s3608_s7 }
  0x2a   :  { %p2770_p4 = pnand %p2768_p3, %p2765_p2 }
  0x2c   :  { %2773 = shalt.err (!%p2770_p4)
}
  0x2d   :  { %s2774_s28 = scalar_lea.vmem %s88_s23, 256  ;;  %p2779_p6 = scmp.lt.s32.totalorder %s88_s23, %s88_s23 }
  0x2e   :  { %p2775_p5 = scmp.ne.s32.totalorder %s88_s23, %s2774_s28  ;;  %p2780_p7 = scmp.lt.s32.totalorder %s2774_s28, %s2774_s28 }
  0x30   :  { %p2781_p8 = por %p2780_p7, %p2779_p6 }
  0x32   :  { %p2782_p9 = pnand %p2781_p8, %p2775_p5 }
  0x34   :  { %2785 = shalt.err (!%p2782_p9)
}
  0x35   :  { %93 = dma.hbm_to_vmem [thread:$0]  %s3608_s7, 256, %s88_s23, [#allocation13], %s2933_s26, %s2933_s26, %s2934_s15  }
  0x36   :  { %s2935_s29 = smov [#allocation3]   ;;  %s2936_s14 = smov [#allocation8]  }
  0x37   :  { %s30_s30 = sshll.u32 %s2935_s29, 4  ;;  %s51_s1 = sshll.u32 %s2936_s14, 4  ;;  %s31_s30 = int_to_ptr.vmem [resolvable:$true] %s30_s30  ;;  %s52_s1 = int_to_ptr.vmem [resolvable:$true] %s51_s1 }
  0x38   :  { %s2786_s18 = scalar_lea.hbm %s3601_s0, 32 }
  0x39   :  { %p2787_p10 = scmp.ne.s32.totalorder %s3601_s0, %s2786_s18  ;;  %p2790_p11 = scmp.lt.u32.totalorder %s2786_s18, %s3601_s0 }
  0x3b   :  { %p2792_p12 = pnand %p2790_p11, %p2787_p10 }
  0x3d   :  { %2795 = shalt.err (!%p2792_p12)
}
  0x3e   :  { %s2796_s7 = scalar_lea.vmem %s31_s30, 32  ;;  %p2801_p0 = scmp.lt.s32.totalorder %s31_s30, %s31_s30 }
  0x3f   :  { %p2797_p13 = scmp.ne.s32.totalorder %s31_s30, %s2796_s7  ;;  %p2802_p1 = scmp.lt.s32.totalorder %s2796_s7, %s2796_s7 }
  0x41   :  { %p2803_p2 = por %p2802_p1, %p2801_p0 }
  0x43   :  { %p2804_p3 = pnand %p2803_p2, %p2797_p13 }
  0x45   :  { %2807 = shalt.err (!%p2804_p3)
}
  0x46   :  { %33 = dma.hbm_to_vmem [thread:$0]  %s3601_s0, 32, %s31_s30, [#allocation4]  }
  0x47   :  { %s2808_s4 = scalar_lea.hbm %s3604_s3, 128 }
  0x48   :  { %p2809_p4 = scmp.ne.s32.totalorder %s3604_s3, %s2808_s4  ;;  %p2812_p5 = scmp.lt.u32.totalorder %s2808_s4, %s3604_s3 }
  0x4a   :  { %p2814_p6 = pnand %p2812_p5, %p2809_p4 }
  0x4c   :  { %2817 = shalt.err (!%p2814_p6)
}
  0x4d   :  { %s2818_s17 = scalar_lea.vmem %s52_s1, 128  ;;  %p2823_p8 = scmp.lt.s32.totalorder %s52_s1, %s52_s1 }
  0x4e   :  { %p2819_p7 = scmp.ne.s32.totalorder %s52_s1, %s2818_s17  ;;  %p2824_p9 = scmp.lt.s32.totalorder %s2818_s17, %s2818_s17 }
  0x50   :  { %p2825_p10 = por %p2824_p9, %p2823_p8 }
  0x52   :  { %p2826_p11 = pnand %p2825_p10, %p2819_p7 }
  0x54   :  { %2829 = shalt.err (!%p2826_p11)
}
  0x55   :  { %57 = dma.hbm_to_vmem [thread:$0]  %s3604_s3, 128, %s52_s1, [#allocation7], %s2933_s26, %s2933_s26, %s2934_s15  }
  0x56   :  { %s2937_s18 = smov [#allocation11]   ;;  %s2938_s20 = smov [#allocation14]  }
  0x57   :  { %s76_s19 = sshll.u32 %s2937_s18, 4  ;;  %s100_s22 = sshll.u32 %s2938_s20, 4  ;;  %s77_s19 = int_to_ptr.vmem [resolvable:$true] %s76_s19  ;;  %s101_s22 = int_to_ptr.vmem [resolvable:$true] %s100_s22 }
  0x58   :  { %s2830_s23 = scalar_lea.hbm %s3606_s5, 16 }
  0x59   :  { %p2831_p12 = scmp.ne.s32.totalorder %s3606_s5, %s2830_s23  ;;  %p2834_p13 = scmp.lt.u32.totalorder %s2830_s23, %s3606_s5 }
  0x5b   :  { %p2836_p0 = pnand %p2834_p13, %p2831_p12 }
  0x5d   :  { %2839 = shalt.err (!%p2836_p0)
}
  0x5e   :  { %s2840_s3 = scalar_lea.vmem %s77_s19, 16  ;;  %s2844_s15 = scalar_lea.vmem %s77_s19, 32 }
  0x5f   :  { %p2841_p1 = scmp.ne.s32.totalorder %s77_s19, %s2840_s3  ;;  %p2845_p2 = scmp.lt.s32.totalorder %s77_s19, %s77_s19 }
  0x60   :  { %p2846_p3 = scmp.lt.s32.totalorder %s2844_s15, %s2840_s3 }
  0x62   :  { %p2847_p4 = por %p2846_p3, %p2845_p2 }
  0x64   :  { %p2848_p5 = pnand %p2847_p4, %p2841_p1 }
  0x66   :  { %2851 = shalt.err (!%p2848_p5)
}
  0x67   :  { %79 = dma.hbm_to_vmem [thread:$0]  %s3606_s5, 16, %s77_s19, [#allocation10]  }
  0x68   :  { %s2852_s16 = scalar_lea.hbm %s3609_s8, 16 }
  0x69   :  { %p2853_p6 = scmp.ne.s32.totalorder %s3609_s8, %s2852_s16  ;;  %p2856_p7 = scmp.lt.u32.totalorder %s2852_s16, %s3609_s8 }
  0x6b   :  { %p2858_p8 = pnand %p2856_p7, %p2853_p6 }
  0x6d   :  { %2861 = shalt.err (!%p2858_p8)
}
  0x6e   :  { %s2862_s20 = scalar_lea.vmem %s101_s22, 16  ;;  %s2866_s24 = scalar_lea.vmem %s101_s22, 32 }
  0x6f   :  { %p2863_p9 = scmp.ne.s32.totalorder %s101_s22, %s2862_s20  ;;  %p2867_p10 = scmp.lt.s32.totalorder %s101_s22, %s101_s22 }
  0x70   :  { %p2868_p11 = scmp.lt.s32.totalorder %s2866_s24, %s2862_s20 }
  0x72   :  { %p2869_p12 = por %p2868_p11, %p2867_p10 }
  0x74   :  { %p2870_p13 = pnand %p2869_p12, %p2863_p9 }
  0x76   :  { %2873 = shalt.err (!%p2870_p13)
}
  0x77   :  { %103 = dma.hbm_to_vmem [thread:$0]  %s3609_s8, 16, %s101_s22, [#allocation13]  }
  0x78   :  { %s2939_s7 = smov [#allocation15]   ;;  %s2874_s28 = scalar_lea.hbm %s3610_s9, 64 }
  0x79   :  { %s109_s23 = sshll.u32 %s2939_s7, 4  ;;  %p2875_p0 = scmp.ne.s32.totalorder %s3610_s9, %s2874_s28  ;;  %s110_s23 = int_to_ptr.vmem [resolvable:$true] %s109_s23 }
  0x7a   :  { %p2878_p1 = scmp.lt.u32.totalorder %s2874_s28, %s3610_s9 }
  0x7c   :  { %p2880_p2 = pnand %p2878_p1, %p2875_p0 }
  0x7e   :  { %2883 = shalt.err (!%p2880_p2)
}
  0x7f   :  { %s2884_s21 = scalar_lea.vmem %s110_s23, 64  ;;  %p2889_p4 = scmp.lt.s32.totalorder %s110_s23, %s110_s23 }
  0x80   :  { %p2885_p3 = scmp.ne.s32.totalorder %s110_s23, %s2884_s21  ;;  %p2890_p5 = scmp.lt.s32.totalorder %s2884_s21, %s2884_s21 }
  0x82   :  { %p2891_p6 = por %p2890_p5, %p2889_p4 }
  0x84   :  { %p2892_p7 = pnand %p2891_p6, %p2885_p3 }
  0x86   :  { %2895 = shalt.err (!%p2892_p7)
}
  0x87   :  { %s2940_s8 = smov 32   ;;  %s2941_s22 = smov 2  }
  0x88   :  { %115 = dma.hbm_to_vmem [thread:$0]  %s3610_s9, 64, %s110_s23, [#allocation16], %s2940_s8, %s2940_s8, %s2941_s22  }
  0x89   :  { %2918 = dma.done.wait [#allocation4], 32  }
  0x8a   :  { %2919 = vsyncadd [#allocation4], 4294967264 }
  0x8b   :  { %2920 = dma.done.wait [#allocation7], 192  }
  0x8c   :  { %2921 = vsyncadd [#allocation7], 4294967104 }
  0x8d   :  { %2922 = dma.done.wait [#allocation10], 272  }
  0x8e   :  { %2923 = vsyncadd [#allocation10], 4294967024 }
  0x8f   :  { %2924 = dma.done.wait [#allocation13], 272  }
  0x90   :  { %2925 = vsyncadd [#allocation13], 4294967024 }
  0x91   :  { %2926 = dma.done.wait [#allocation16], 64  }
  0x92   :  { %2927 = vsyncadd [#allocation16], 4294967232  ;;  %v2942_v0 = vmov 0.0   ;;  %vm2943_vm0 = vmmov 0   ;;  %vm161_vm1 = vcmask 1043456   ;;  %vm157_vm2 = vcmask 64512  }
  0x93   :  { %2350 = vmatprep.subr.bf16.mxu0 %v2942_v0  ;;  %2352 = vmatprep.mubr.msk.bf16.mxu0 %vm2943_vm0, %v2942_v0  ;;  %v149_v1 = vld [vmem:[#allocation6] sm:$0xf]  ;;  %v147_v2 = vld [vmem:[#allocation3] sm:$0x3]  ;;  %v3131_v5 = vld [vmem:[#allocation9] sm:$0xff]   ;;  %vm303_vm3 = vcmask 261120  }
  0x94   :  { %2356 = vmatprep.subr.bf16.mxu1 %v2942_v0  ;;  %2358 = vmatprep.mubr.msk.bf16.mxu1 %vm2943_vm0, %v2942_v0  ;;  %v163_v3 = vsel %vm161_vm1, %v149_v1, 0  ;;  %v148_v4 = vpack.c.bf16 %v147_v2, %v147_v2  ;;  %v3138_v6 = vld [vmem:[#allocation9 + $0x8] sm:$0xff]   ;;  %v2582_v7 = vld [vmem:[#allocation8] sm:$0xff]   ;;  %v284_v8 = vld [vmem:[#allocation15] sm:$0x3]  ;;  %vm240_vm4 = vcmask 130048  }
  0x95   :  { %2351 = vmatpush3.bf16.msra.mxu0 %v163_v3  ;;  %2357 = vmatpush3.bf16.msra.mxu1 %v2582_v7  ;;  %v290_v9 = vpack.c.bf16 %v284_v8, %v284_v8  ;;  %v2214_v10 = vld [vmem:[%s3603_s2] ss:$0 sm:$0xff]  ;;  %v2216_v21 = vld [vmem:[#allocation11] ss:$0 sm:$0xff]  ;;  %v3163_v40 = vld [vmem:[#allocation12] sm:$0xff]   ;;  %vm557_vm5 = vcmask 253952  }
  0x96   :  { %2362 = vmatprep.subr.bf16.mxu0 %v2942_v0  ;;  %2370 = vmatprep.subr.bf16.mxu1 %v2942_v0  ;;  %v287_v29 = vld [vmem:[%s3611_s10] sm:$0x3]  ;;  %v286_v43 = vld [vmem:[#allocation15 + $0x2] sm:$0x3]  ;;  %v3208_v55 = vld [vmem:[#allocation14] ss:$0 sm:$0xff] }
  0x97   :  { %v3168_v41 = vld [vmem:[%s3607_s6] sm:$0xff]   ;;  %v3178_v44 = vld [vmem:[%s3607_s6 + $0x8] sm:$0xff]   ;;  %v377_v45 = vpack.c.bf16 %v286_v43, %v286_v43  ;;  %s2945_s23 = smov [#allocation17]  }
  0x98   :  { %2353 = vmatmul.mubr.msk.bf16.vlgmr.msra.gmra.mrb[0].mxu0 %vm157_vm2, %v148_v4  ;;  %v3171_v42 = vld [vmem:[#allocation12 + $0x8] sm:$0xff]   ;;  %s2198_s25 = sshll.u32 %s2945_s23, 4  ;;  %s2199_s25 = int_to_ptr.vmem [resolvable:$true] %s2198_s25 }
  0x99   :  { %2363 = vmatpush3.bf16.msra.mxu0 %v3131_v5  ;;  %2366 = vmatprep.mubr.msk.bf16.mxu0 %vm2943_vm0, %v2942_v0  ;;  %v2220_v8 = vld [vmem:[%s3611_s10 + $0x2] sm:$0x3]  ;;  %s2896_s27 = scalar_lea.vmem %s2199_s25, 256  ;;  %p2901_p9 = scmp.lt.s32.totalorder %s2199_s25, %s2199_s25 }
  0x9a   :  { %2364 = vmatprep.subr.bf16.mxu0 %v2942_v0  ;;  %p2897_p8 = scmp.ne.s32.totalorder %s2199_s25, %s2896_s27  ;;  %p2902_p10 = scmp.lt.s32.totalorder %s2896_s27, %s2896_s27 }
  0x9c   :  { %p2903_p11 = por %p2902_p10, %p2901_p9 }
  0x9d   :  { %2365 = vmatpush3.bf16.msra.mxu0 %v3138_v6 }
  0x9e   :  { %2378 = vmatprep.subr.bf16.mxu0 %v2942_v0  ;;  %p2904_p12 = pnand %p2903_p11, %p2897_p8 }
  0xa0   :  { %2367 = vmatmul.mubr.msk.bf16.vlgmr.msra.gmra.mrb[4].mxu0 %vm303_vm3, %v290_v9 }
  0xa1   :  { %2382 = vmatprep.mubr.msk.bf16.mxu0 %vm2943_vm0, %v2942_v0  ;;  %2379 = vmatpush3.bf16.msra.mxu0 %v3168_v41 }
  0xa2   :  { %2380 = vmatprep.subr.bf16.mxu0 %v2942_v0 }
  0xa5   :  { %2381 = vmatpush3.bf16.msra.mxu0 %v3178_v44 }
  0xa6   :  { %2394 = vmatprep.subr.bf16.mxu0 %v2942_v0 }
 0x16b   :  { %v199_v11 = vpop.f32.mrb[0].mxu0 }
 0x16c   :  { %v200_v12 = vadd.f32 %v2214_v10, %v199_v11  ;;  %v2354_v13 = vpop.f32.mrb[1].mxu0 }
 0x16d   :  { %v202_v14 = vpop.f32.mrb[2].mxu0 }
 0x16e   :  { %v233_v15 = vpack.c.bf16 %v200_v12, %v200_v12  ;;  %v2355_v16 = vpop.f32.mrb[3].mxu0 }
 0x170   :  { %2359 = vmatmul.mubr.msk.bf16.vlgmr.msra.gmra.mrb[0].mxu1 %vm240_vm4, %v233_v15 }
 0x171   :  { %2374 = vmatprep.mubr.msk.bf16.mxu1 %vm2943_vm0, %v2942_v0  ;;  %2371 = vmatpush3.bf16.msra.mxu1 %v3163_v40 }
 0x172   :  { %2372 = vmatprep.subr.bf16.mxu1 %v2942_v0 }
 0x173   :  { %v341_v17 = vpop.f32.mrb[4].mxu0 }
 0x174   :  { %v2368_v18 = vpop.f32.mrb[5].mxu0 }
 0x175   :  { %v344_v19 = vpop.f32.mrb[6].mxu0  ;;  %2373 = vmatpush3.bf16.msra.mxu1 %v3171_v42 }
 0x176   :  { %v2369_v20 = vpop.f32.mrb[7].mxu0  ;;  %2386 = vmatprep.subr.bf16.mxu1 %v2942_v0 }
 0x178   :  { %2375 = vmatmul.mubr.msk.bf16.vlgmr.msra.gmra.mrb[4].mxu1 %vm303_vm3, %v377_v45 }
 0x179   :  { %2387 = vmatpush3.bf16.msra.mxu1 %v3131_v5  ;;  %2390 = vmatprep.mubr.msk.bf16.mxu1 %vm2943_vm0, %v2942_v0 }
 0x17a   :  { %2388 = vmatprep.subr.bf16.mxu1 %v2942_v0 }
 0x17d   :  { %2389 = vmatpush3.bf16.msra.mxu1 %v3138_v6 }
 0x17e   :  { %2402 = vmatprep.subr.bf16.mxu1 %v2942_v0 }
 0x243   :  { %v278_v22 = vpop.f32.mrb[0].mxu1 }
 0x244   :  { %v3151_v23 = vadd.f32 %v2216_v21, %v278_v22  ;;  %v2360_v24 = vpop.f32.mrb[1].mxu1 }
 0x245   :  { %v281_v25 = vpop.f32.mrb[2].mxu1 }
 0x246   :  { %v2361_v26 = vpop.f32.mrb[3].mxu1  ;;  %v347_v27 = vadd.f32 %v341_v17, %v3151_v23 }
 0x248   :  { %2589 = vtanh.f32 %v347_v27  ;;  %v2224_v30 = vmul.f32 -1.442695, %v347_v27 }
 0x24a   :  { %2591 = vpow2.f32 %v2224_v30 }
 0x24b   :  { %v427_v50 = vpop.f32.mrb[4].mxu1 }
 0x24c   :  { %v2376_v51 = vpop.f32.mrb[5].mxu1 }
 0x24d   :  { %v430_v52 = vpop.f32.mrb[6].mxu1 }
 0x24e   :  { %v2377_v53 = vpop.f32.mrb[7].mxu1 }
 0x252   :  { %v2590_v28 = vpop.eup %2589 }
 0x253   :  { %361 = vrot.lane.b32.xlu0 %v2590_v28, %s2940_s8 }
 0x254   :  { %v2592_v31 = vpop.eup %2591 }
 0x255   :  { %v351_v32 = vadd.f32 1.0, %v2592_v31 }
 0x257   :  { %356 = vrot.lane.b32.xlu0 %v287_v29, %s2940_s8  ;;  %2593 = vrcp.f32 %v351_v32 }
 0x261   :  { %v2594_v33 = vpop.eup %2593 }
 0x2c5   :  { %v362_v34 = vpop.permute.xlu0 %361 }
 0x2c6   :  { %v364_v35 = vmul.f32 %v2594_v33, %v362_v34 }
 0x2c8   :  { %366 = vrot.lane.b32.xlu1 %v364_v35, %s2940_s8 }
 0x2c9   :  { %v357_v36 = vpop.permute.xlu0 %356 }
 0x2ca   :  { %v359_v37 = vmul.f32 %v2594_v33, %v357_v36 }
 0x33a   :  { %v367_v38 = vpop.permute.xlu1 %366 }
 0x33b   :  { %v3160_v39 = vadd.f32 %v367_v38, %v359_v37 }
 0x33d   :  { %2595 = vtanh.f32 %v3160_v39 }
 0x347   :  { %v2596_v46 = vpop.eup %2595 }
 0x348   :  { %372 = vrot.lane.b32.xlu1 %v2596_v46, %s2940_s8 }
 0x3ba   :  { %v373_v47 = vpop.permute.xlu1 %372 }
 0x3bb   :  { %v375_v48 = vmul.f32 %v2594_v33, %v373_v47 }
 0x3bd   :  { %v376_v49 = vpack.c.bf16 %v375_v48, %v375_v48 }
 0x3bf   :  { %434 = vrot.lane.b32.xlu0 %v376_v49, %s2933_s26 }
 0x431   :  { %v435_v54 = vpop.permute.xlu0 %434 }
 0x432   :  { %2383 = vmatmul.mubr.msk.bf16.vlgmr.msra.gmra.mrb[8].mxu0 %vm303_vm3, %v435_v54  ;;  %2391 = vmatmul.mubr.msk.bf16.vlgmr.msra.gmra.mrb[8].mxu1 %vm303_vm3, %v435_v54 }
 0x433   :  { %2403 = vmatpush3.bf16.msra.mxu1 %v3168_v41  ;;  %2395 = vmatpush3.bf16.msra.mxu0 %v3163_v40 }
 0x434   :  { %2404 = vmatprep.subr.bf16.mxu1 %v2942_v0  ;;  %2396 = vmatprep.subr.bf16.mxu0 %v2942_v0 }
 0x435   :  { %2406 = vmatprep.mubr.msk.bf16.mxu1 %vm2943_vm0, %v2942_v0  ;;  %2398 = vmatprep.mubr.msk.bf16.mxu0 %vm2943_vm0, %v2942_v0 }
 0x437   :  { %2405 = vmatpush3.bf16.msra.mxu1 %v3178_v44  ;;  %2397 = vmatpush3.bf16.msra.mxu0 %v3171_v42 }
 0x438   :  { %2410 = vmatprep.subr.bf16.mxu0 %v2942_v0  ;;  %2418 = vmatprep.subr.bf16.mxu1 %v2942_v0 }
 0x505   :  { %v485_v56 = vpop.f32.mrb[8].mxu0  ;;  %v594_v57 = vpop.f32.mrb[8].mxu1 }
 0x506   :  { %v486_v58 = vadd.f32 %v485_v56, %v427_v50  ;;  %v600_v59 = vadd.f32 %v594_v57, %v3151_v23  ;;  %v2384_v60 = vpop.f32.mrb[9].mxu0  ;;  %v2392_v61 = vpop.f32.mrb[9].mxu1 }
 0x507   :  { %v488_v62 = vpop.f32.mrb[10].mxu0  ;;  %v597_v63 = vpop.f32.mrb[10].mxu1 }
 0x508   :  { %v491_v1 = vadd.f32 %v3208_v55, %v486_v58  ;;  %2597 = vtanh.f32 %v600_v59  ;;  %v2385_v2 = vpop.f32.mrb[11].mxu0  ;;  %v2393_v3 = vpop.f32.mrb[11].mxu1  ;;  %v2233_v9 = vmul.f32 -1.442695, %v600_v59 }
 0x50a   :  { %2599 = vtanh.f32 %v491_v1  ;;  %v2231_v10 = vmul.f32 -1.442695, %v491_v1 }
 0x50b   :  { %2601 = vpow2.f32 %v2233_v9 }
 0x50c   :  { %2603 = vpow2.f32 %v2231_v10 }
 0x512   :  { %v2598_v4 = vpop.eup %2597 }
 0x513   :  { %610 = vrot.lane.b32.xlu0 %v2598_v4, %s2940_s8 }
 0x514   :  { %v2600_v7 = vpop.eup %2599 }
 0x515   :  { %505 = vrot.lane.b32.xlu1 %v2600_v7, %s2940_s8  ;;  %v2602_v11 = vpop.eup %2601 }
 0x516   :  { %v2604_v12 = vpop.eup %2603  ;;  %v604_v13 = vadd.f32 1.0, %v2602_v11 }
 0x517   :  { %v495_v14 = vadd.f32 1.0, %v2604_v12 }
 0x518   :  { %2605 = vrcp.f32 %v604_v13 }
 0x519   :  { %500 = vrot.lane.b32.xlu1 %v2220_v8, %s2940_s8  ;;  %2607 = vrcp.f32 %v495_v14 }
 0x522   :  { %v2606_v15 = vpop.eup %2605 }
 0x523   :  { %v2608_v18 = vpop.eup %2607  ;;  %v608_v22 = vmul.f32 %v2606_v15, %v3160_v39 }
 0x585   :  { %v611_v16 = vpop.permute.xlu0 %610 }
 0x586   :  { %v613_v17 = vmul.f32 %v2606_v15, %v611_v16 }
 0x587   :  { %v506_v19 = vpop.permute.xlu1 %505 }
 0x588   :  { %v508_v20 = vmul.f32 %v2608_v18, %v506_v19  ;;  %615 = vrot.lane.b32.xlu1 %v613_v17, %s2940_s8 }
 0x58a   :  { %510 = vrot.lane.b32.xlu0 %v508_v20, %s2940_s8 }
 0x58b   :  { %v501_v21 = vpop.permute.xlu1 %500 }
 0x58c   :  { %v503_v25 = vmul.f32 %v2608_v18, %v501_v21 }
 0x5fa   :  { %v616_v24 = vpop.permute.xlu1 %615 }
 0x5fb   :  { %v3221_v26 = vadd.f32 %v616_v24, %v608_v22 }
 0x5fc   :  { %v511_v27 = vpop.permute.xlu0 %510 }
 0x5fd   :  { %2609 = vtanh.f32 %v3221_v26  ;;  %v3224_v28 = vadd.f32 %v511_v27, %v503_v25 }
 0x5ff   :  { %2611 = vtanh.f32 %v3224_v28 }
 0x607   :  { %v2610_v29 = vpop.eup %2609 }
 0x608   :  { %621 = vrot.lane.b32.xlu1 %v2610_v29, %s2940_s8 }
 0x609   :  { %v2612_v30 = vpop.eup %2611 }
 0x60a   :  { %516 = vrot.lane.b32.xlu0 %v2612_v30, %s2940_s8 }
 0x67a   :  { %v622_v31 = vpop.permute.xlu1 %621 }
 0x67b   :  { %v624_v32 = vmul.f32 %v2606_v15, %v622_v31 }
 0x67c   :  { %v517_v33 = vpop.permute.xlu0 %516 }
 0x67d   :  { %v625_v34 = vpack.c.bf16 %v624_v32, %v624_v32  ;;  %v3229_v35 = vmul.f32 %v2608_v18, %v517_v33 }
 0x67f   :  { %674 = vrot.lane.b32.xlu1 %v625_v34, %s2933_s26  ;;  %v626_v36 = vpack.c.bf16 %v3229_v35, %v3229_v35 }
 0x681   :  { %628 = vrot.lane.b32.xlu0 %v626_v36, %s2933_s26 }
 0x6f1   :  { %v675_v37 = vpop.permute.xlu1 %674 }
 0x6f2   :  { %2407 = vmatmul.mubr.msk.bf16.vlgmr.msra.gmra.mrb[12].mxu1 %vm303_vm3, %v675_v37 }
 0x6f3   :  { %v629_v38 = vpop.permute.xlu0 %628  ;;  %2419 = vmatpush3.bf16.msra.mxu1 %v3163_v40  ;;  %2422 = vmatprep.mubr.msk.bf16.mxu1 %vm2943_vm0, %v2942_v0 }
 0x6f4   :  { %2399 = vmatmul.mubr.msk.bf16.vlgmr.msra.gmra.mrb[12].mxu0 %vm303_vm3, %v629_v38  ;;  %2420 = vmatprep.subr.bf16.mxu1 %v2942_v0 }
 0x6f5   :  { %2411 = vmatpush3.bf16.msra.mxu0 %v3131_v5  ;;  %2414 = vmatprep.mubr.msk.bf16.mxu0 %vm2943_vm0, %v2942_v0 }
 0x6f6   :  { %2412 = vmatprep.subr.bf16.mxu0 %v2942_v0 }
 0x6f7   :  { %2421 = vmatpush3.bf16.msra.mxu1 %v3171_v42 }
 0x6f8   :  { %2434 = vmatprep.subr.bf16.mxu1 %v2942_v0 }
 0x6f9   :  { %2413 = vmatpush3.bf16.msra.mxu0 %v3138_v6 }
 0x6fa   :  { %2426 = vmatprep.subr.bf16.mxu0 %v2942_v0 }
 0x6fc   :  { %2415 = vmatmul.mubr.msk.bf16.vlgmr.msra.gmra.mrb[16].mxu0 %vm303_vm3, %v675_v37 }
 0x6fd   :  { %2427 = vmatpush3.bf16.msra.mxu0 %v3168_v41  ;;  %2430 = vmatprep.mubr.msk.bf16.mxu0 %vm2943_vm0, %v2942_v0 }
 0x6fe   :  { %2428 = vmatprep.subr.bf16.mxu0 %v2942_v0 }
 0x701   :  { %2429 = vmatpush3.bf16.msra.mxu0 %v3178_v44 }
 0x702   :  { %2442 = vmatprep.subr.bf16.mxu0 %v2942_v0 }
 0x7c5   :  { %v713_v39 = vpop.f32.mrb[12].mxu1 }
 0x7c6   :  { %v2408_v43 = vpop.f32.mrb[13].mxu1 }
 0x7c7   :  { %v667_v45 = vpop.f32.mrb[12].mxu0  ;;  %v716_v46 = vpop.f32.mrb[14].mxu1 }
 0x7c8   :  { %v714_v47 = vadd.f32 %v713_v39, %v667_v45  ;;  %v2400_v48 = vpop.f32.mrb[13].mxu0  ;;  %v2409_v49 = vpop.f32.mrb[15].mxu1 }
 0x7c9   :  { %v670_v50 = vpop.f32.mrb[14].mxu0 }
 0x7ca   :  { %v719_v51 = vadd.f32 %v3208_v55, %v714_v47  ;;  %v2401_v52 = vpop.f32.mrb[15].mxu0 }
 0x7cc   :  { %2613 = vtanh.f32 %v719_v51  ;;  %v2236_v61 = vmul.f32 -1.442695, %v719_v51 }
 0x7cf   :  { %v817_v53 = vpop.f32.mrb[16].mxu0 }
 0x7d0   :  { %v823_v54 = vadd.f32 %v817_v53, %v3151_v23  ;;  %v2416_v56 = vpop.f32.mrb[17].mxu0 }
 0x7d1   :  { %v820_v57 = vpop.f32.mrb[18].mxu0 }
 0x7d2   :  { %2615 = vtanh.f32 %v823_v54  ;;  %v2417_v58 = vpop.f32.mrb[19].mxu0  ;;  %v2238_v62 = vmul.f32 -1.442695, %v823_v54 }
 0x7d3   :  { %2617 = vpow2.f32 %v2236_v61 }
 0x7d4   :  { %2619 = vpow2.f32 %v2238_v62 }
 0x7d6   :  { %v2614_v59 = vpop.eup %2613 }
 0x7d7   :  { %729 = vrot.lane.b32.xlu0 %v2614_v59, %s2940_s8 }
 0x7dc   :  { %v2616_v60 = vpop.eup %2615 }
 0x7dd   :  { %833 = vrot.lane.b32.xlu1 %v2616_v60, %s2940_s8  ;;  %v2618_v63 = vpop.eup %2617 }
 0x7de   :  { %v723_v1 = vadd.f32 1.0, %v2618_v63  ;;  %v2620_v2 = vpop.eup %2619 }
 0x7df   :  { %v827_v3 = vadd.f32 1.0, %v2620_v2 }
 0x7e0   :  { %2621 = vrcp.f32 %v723_v1 }
 0x7e1   :  { %2623 = vrcp.f32 %v827_v3 }
 0x7ea   :  { %v2622_v4 = vpop.eup %2621 }
 0x7eb   :  { %v2624_v9 = vpop.eup %2623  ;;  %v727_v12 = vmul.f32 %v2622_v4, %v3224_v28 }
 0x7ec   :  { %v831_v15 = vmul.f32 %v2624_v9, %v3221_v26 }
 0x849   :  { %v730_v7 = vpop.permute.xlu0 %729 }
 0x84a   :  { %v732_v8 = vmul.f32 %v2622_v4, %v730_v7 }
 0x84c   :  { %734 = vrot.lane.b32.xlu0 %v732_v8, %s2940_s8 }
 0x84f   :  { %v834_v10 = vpop.permute.xlu1 %833 }
 0x850   :  { %v836_v11 = vmul.f32 %v2624_v9, %v834_v10 }
 0x852   :  { %838 = vrot.lane.b32.xlu1 %v836_v11, %s2940_s8 }
 0x8be   :  { %v735_v13 = vpop.permute.xlu0 %734 }
 0x8bf   :  { %v3263_v14 = vadd.f32 %v735_v13, %v727_v12 }
 0x8c1   :  { %2625 = vtanh.f32 %v3263_v14 }
 0x8c4   :  { %v839_v16 = vpop.permute.xlu1 %838 }
 0x8c5   :  { %v3267_v17 = vadd.f32 %v839_v16, %v831_v15 }
 0x8c7   :  { %2627 = vtanh.f32 %v3267_v17 }
 0x8cb   :  { %v2626_v18 = vpop.eup %2625 }
 0x8cc   :  { %740 = vrot.lane.b32.xlu0 %v2626_v18, %s2940_s8 }
 0x8d1   :  { %v2628_v19 = vpop.eup %2627 }
 0x8d2   :  { %844 = vrot.lane.b32.xlu1 %v2628_v19, %s2940_s8 }
 0x93e   :  { %v741_v20 = vpop.permute.xlu0 %740 }
 0x93f   :  { %v3272_v21 = vmul.f32 %v2622_v4, %v741_v20 }
 0x941   :  { %v849_v22 = vpack.c.bf16 %v3272_v21, %v3272_v21 }
 0x943   :  { %851 = vrot.lane.b32.xlu0 %v849_v22, %s2933_s26 }
 0x944   :  { %v845_v24 = vpop.permute.xlu1 %844 }
 0x945   :  { %v847_v25 = vmul.f32 %v2624_v9, %v845_v24 }
 0x947   :  { %v848_v26 = vpack.c.bf16 %v847_v25, %v847_v25 }
 0x949   :  { %897 = vrot.lane.b32.xlu1 %v848_v26, %s2933_s26 }
 0x9b5   :  { %v852_v27 = vpop.permute.xlu0 %851 }
 0x9b6   :  { %2423 = vmatmul.mubr.msk.bf16.vlgmr.msra.gmra.mrb[16].mxu1 %vm303_vm3, %v852_v27 }
 0x9b7   :  { %2435 = vmatpush3.bf16.msra.mxu1 %v3131_v5  ;;  %2438 = vmatprep.mubr.msk.bf16.mxu1 %vm2943_vm0, %v2942_v0 }
 0x9b8   :  { %2436 = vmatprep.subr.bf16.mxu1 %v2942_v0 }
 0x9bb   :  { %2437 = vmatpush3.bf16.msra.mxu1 %v3138_v6  ;;  %v898_v28 = vpop.permute.xlu1 %897 }
 0x9bc   :  { %2431 = vmatmul.mubr.msk.bf16.vlgmr.msra.gmra.mrb[20].mxu0 %vm303_vm3, %v898_v28  ;;  %2450 = vmatprep.subr.bf16.mxu1 %v2942_v0 }
 0x9bd   :  { %2443 = vmatpush3.bf16.msra.mxu0 %v3163_v40  ;;  %2446 = vmatprep.mubr.msk.bf16.mxu0 %vm2943_vm0, %v2942_v0 }
 0x9be   :  { %2439 = vmatmul.mubr.msk.bf16.vlgmr.msra.gmra.mrb[20].mxu1 %vm303_vm3, %v898_v28  ;;  %2444 = vmatprep.subr.bf16.mxu0 %v2942_v0 }
 0x9bf   :  { %2451 = vmatpush3.bf16.msra.mxu1 %v3168_v41  ;;  %2454 = vmatprep.mubr.msk.bf16.mxu1 %vm2943_vm0, %v2942_v0 }
 0x9c0   :  { %2452 = vmatprep.subr.bf16.mxu1 %v2942_v0 }
 0x9c1   :  { %2445 = vmatpush3.bf16.msra.mxu0 %v3171_v42 }
 0x9c2   :  { %2458 = vmatprep.subr.bf16.mxu0 %v2942_v0 }
 0x9c3   :  { %2453 = vmatpush3.bf16.msra.mxu1 %v3178_v44 }
 0x9c4   :  { %2466 = vmatprep.subr.bf16.mxu1 %v2942_v0 }
 0xa89   :  { %v890_v29 = vpop.f32.mrb[16].mxu1 }
 0xa8a   :  { %v2424_v30 = vpop.f32.mrb[17].mxu1 }
 0xa8b   :  { %v893_v31 = vpop.f32.mrb[18].mxu1 }
 0xa8c   :  { %v2425_v32 = vpop.f32.mrb[19].mxu1 }
 0xa8f   :  { %v936_v33 = vpop.f32.mrb[20].mxu0 }
 0xa90   :  { %v937_v34 = vadd.f32 %v936_v33, %v890_v29  ;;  %v2432_v36 = vpop.f32.mrb[21].mxu0 }
 0xa91   :  { %v939_v37 = vpop.f32.mrb[22].mxu0  ;;  %v1040_v38 = vpop.f32.mrb[20].mxu1 }
 0xa92   :  { %v942_v39 = vadd.f32 %v3208_v55, %v937_v34  ;;  %v1046_v43 = vadd.f32 %v1040_v38, %v3151_v23  ;;  %v2433_v45 = vpop.f32.mrb[23].mxu0  ;;  %v2440_v46 = vpop.f32.mrb[21].mxu1 }
 0xa93   :  { %v1043_v47 = vpop.f32.mrb[22].mxu1 }
 0xa94   :  { %2629 = vtanh.f32 %v942_v39  ;;  %v2441_v48 = vpop.f32.mrb[23].mxu1  ;;  %v2241_v51 = vmul.f32 -1.442695, %v942_v39  ;;  %v2243_v52 = vmul.f32 -1.442695, %v1046_v43 }
 0xa95   :  { %2631 = vtanh.f32 %v1046_v43 }
 0xa96   :  { %2633 = vpow2.f32 %v2241_v51 }
 0xa97   :  { %2635 = vpow2.f32 %v2243_v52 }
 0xa9e   :  { %v2630_v49 = vpop.eup %2629 }
 0xa9f   :  { %v2632_v50 = vpop.eup %2631  ;;  %952 = vrot.lane.b32.xlu0 %v2630_v49, %s2940_s8 }
 0xaa0   :  { %1056 = vrot.lane.b32.xlu1 %v2632_v50, %s2940_s8  ;;  %v2634_v53 = vpop.eup %2633 }
 0xaa1   :  { %v2636_v54 = vpop.eup %2635  ;;  %v946_v56 = vadd.f32 1.0, %v2634_v53 }
 0xaa2   :  { %v1050_v57 = vadd.f32 1.0, %v2636_v54 }
 0xaa3   :  { %2637 = vrcp.f32 %v946_v56 }
 0xaa4   :  { %2639 = vrcp.f32 %v1050_v57 }
 0xaad   :  { %v2638_v58 = vpop.eup %2637 }
 0xaae   :  { %v2640_v60 = vpop.eup %2639  ;;  %v950_v1 = vmul.f32 %v2638_v58, %v3263_v14 }
 0xaaf   :  { %v1054_v2 = vmul.f32 %v2640_v60, %v3267_v17 }
 0xb11   :  { %v953_v59 = vpop.permute.xlu0 %952 }
 0xb12   :  { %v1057_v61 = vpop.permute.xlu1 %1056  ;;  %v955_v62 = vmul.f32 %v2638_v58, %v953_v59 }
 0xb13   :  { %v1059_v63 = vmul.f32 %v2640_v60, %v1057_v61 }
 0xb14   :  { %957 = vrot.lane.b32.xlu0 %v955_v62, %s2940_s8 }
 0xb15   :  { %1061 = vrot.lane.b32.xlu1 %v1059_v63, %s2940_s8 }
 0xb86   :  { %v958_v3 = vpop.permute.xlu0 %957 }
 0xb87   :  { %v1062_v4 = vpop.permute.xlu1 %1061  ;;  %v3307_v7 = vadd.f32 %v958_v3, %v950_v1 }
 0xb88   :  { %v3309_v8 = vadd.f32 %v1062_v4, %v1054_v2 }
 0xb89   :  { %2641 = vtanh.f32 %v3307_v7 }
 0xb8a   :  { %2643 = vtanh.f32 %v3309_v8 }
 0xb93   :  { %v2642_v9 = vpop.eup %2641 }
 0xb94   :  { %v2644_v10 = vpop.eup %2643  ;;  %963 = vrot.lane.b32.xlu0 %v2642_v9, %s2940_s8 }
 0xb95   :  { %1067 = vrot.lane.b32.xlu1 %v2644_v10, %s2940_s8 }
 0xc06   :  { %v964_v11 = vpop.permute.xlu0 %963 }
 0xc07   :  { %v1068_v12 = vpop.permute.xlu1 %1067  ;;  %v3315_v13 = vmul.f32 %v2638_v58, %v964_v11 }
 0xc08   :  { %v1070_v14 = vmul.f32 %v2640_v60, %v1068_v12 }
 0xc09   :  { %v1072_v15 = vpack.c.bf16 %v3315_v13, %v3315_v13 }
 0xc0a   :  { %v1071_v16 = vpack.c.bf16 %v1070_v14, %v1070_v14 }
 0xc0b   :  { %1074 = vrot.lane.b32.xlu0 %v1072_v15, %s2933_s26 }
 0xc0c   :  { %1120 = vrot.lane.b32.xlu1 %v1071_v16, %s2933_s26 }
 0xc7d   :  { %v1075_v17 = vpop.permute.xlu0 %1074 }
 0xc7e   :  { %v1121_v18 = vpop.permute.xlu1 %1120  ;;  %2447 = vmatmul.mubr.msk.bf16.vlgmr.msra.gmra.mrb[24].mxu0 %vm303_vm3, %v1075_v17 }
 0xc7f   :  { %2455 = vmatmul.mubr.msk.bf16.vlgmr.msra.gmra.mrb[24].mxu1 %vm303_vm3, %v1121_v18  ;;  %2459 = vmatpush3.bf16.msra.mxu0 %v3131_v5 }
 0xc80   :  { %2460 = vmatprep.subr.bf16.mxu0 %v2942_v0  ;;  %2462 = vmatprep.mubr.msk.bf16.mxu0 %vm2943_vm0, %v2942_v0 }
 0xc81   :  { %2467 = vmatpush3.bf16.msra.mxu1 %v3163_v40  ;;  %2470 = vmatprep.mubr.msk.bf16.mxu1 %vm2943_vm0, %v2942_v0 }
 0xc82   :  { %2468 = vmatprep.subr.bf16.mxu1 %v2942_v0 }
 0xc83   :  { %2461 = vmatpush3.bf16.msra.mxu0 %v3138_v6 }
 0xc84   :  { %2474 = vmatprep.subr.bf16.mxu0 %v2942_v0 }
 0xc85   :  { %2469 = vmatpush3.bf16.msra.mxu1 %v3171_v42 }
 0xc86   :  { %2463 = vmatmul.mubr.msk.bf16.vlgmr.msra.gmra.mrb[28].mxu0 %vm303_vm3, %v1121_v18  ;;  %2482 = vmatprep.subr.bf16.mxu1 %v2942_v0 }
 0xc87   :  { %2475 = vmatpush3.bf16.msra.mxu0 %v3168_v41  ;;  %2478 = vmatprep.mubr.msk.bf16.mxu0 %vm2943_vm0, %v2942_v0 }
 0xc88   :  { %2476 = vmatprep.subr.bf16.mxu0 %v2942_v0 }
 0xc8b   :  { %2477 = vmatpush3.bf16.msra.mxu0 %v3178_v44 }
 0xc8c   :  { %2490 = vmatprep.subr.bf16.mxu0 %v2942_v0 }
 0xd51   :  { %v1113_v19 = vpop.f32.mrb[24].mxu0 }
 0xd52   :  { %v1159_v20 = vpop.f32.mrb[24].mxu1  ;;  %v2448_v22 = vpop.f32.mrb[25].mxu0 }
 0xd53   :  { %v1160_v24 = vadd.f32 %v1159_v20, %v1113_v19  ;;  %v2456_v25 = vpop.f32.mrb[25].mxu1  ;;  %v1116_v26 = vpop.f32.mrb[26].mxu0 }
 0xd54   :  { %v1162_v27 = vpop.f32.mrb[26].mxu1  ;;  %v2449_v28 = vpop.f32.mrb[27].mxu0 }
 0xd55   :  { %v1165_v29 = vadd.f32 %v3208_v55, %v1160_v24  ;;  %v2457_v30 = vpop.f32.mrb[27].mxu1 }
 0xd57   :  { %2645 = vtanh.f32 %v1165_v29  ;;  %v2246_v39 = vmul.f32 -1.442695, %v1165_v29 }
 0xd59   :  { %v1263_v31 = vpop.f32.mrb[28].mxu0 }
 0xd5a   :  { %v1269_v32 = vadd.f32 %v1263_v31, %v3151_v23  ;;  %v2464_v33 = vpop.f32.mrb[29].mxu0 }
 0xd5b   :  { %v1266_v34 = vpop.f32.mrb[30].mxu0 }
 0xd5c   :  { %2647 = vtanh.f32 %v1269_v32  ;;  %v2465_v36 = vpop.f32.mrb[31].mxu0  ;;  %v2248_v43 = vmul.f32 -1.442695, %v1269_v32 }
 0xd5d   :  { %2649 = vpow2.f32 %v2246_v39 }
 0xd5e   :  { %2651 = vpow2.f32 %v2248_v43 }
 0xd61   :  { %v2646_v37 = vpop.eup %2645 }
 0xd62   :  { %1175 = vrot.lane.b32.xlu0 %v2646_v37, %s2940_s8 }
 0xd66   :  { %v2648_v38 = vpop.eup %2647 }
 0xd67   :  { %1279 = vrot.lane.b32.xlu1 %v2648_v38, %s2940_s8  ;;  %v2650_v45 = vpop.eup %2649 }
 0xd68   :  { %v1169_v46 = vadd.f32 1.0, %v2650_v45  ;;  %v2652_v47 = vpop.eup %2651 }
 0xd69   :  { %v1273_v48 = vadd.f32 1.0, %v2652_v47 }
 0xd6a   :  { %2653 = vrcp.f32 %v1169_v46 }
 0xd6b   :  { %2655 = vrcp.f32 %v1273_v48 }
 0xd74   :  { %v2654_v49 = vpop.eup %2653 }
 0xd75   :  { %v2656_v52 = vpop.eup %2655  ;;  %v1173_v56 = vmul.f32 %v2654_v49, %v3307_v7 }
 0xd76   :  { %v1277_v59 = vmul.f32 %v2656_v52, %v3309_v8 }
 0xdd4   :  { %v1176_v50 = vpop.permute.xlu0 %1175 }
 0xdd5   :  { %v1178_v51 = vmul.f32 %v2654_v49, %v1176_v50 }
 0xdd7   :  { %1180 = vrot.lane.b32.xlu0 %v1178_v51, %s2940_s8 }
 0xdd9   :  { %v1280_v53 = vpop.permute.xlu1 %1279 }
 0xdda   :  { %v1282_v54 = vmul.f32 %v2656_v52, %v1280_v53 }
 0xddc   :  { %1284 = vrot.lane.b32.xlu1 %v1282_v54, %s2940_s8 }
 0xe49   :  { %v1181_v57 = vpop.permute.xlu0 %1180 }
 0xe4a   :  { %v3349_v58 = vadd.f32 %v1181_v57, %v1173_v56 }
 0xe4c   :  { %2657 = vtanh.f32 %v3349_v58 }
 0xe4e   :  { %v1285_v60 = vpop.permute.xlu1 %1284 }
 0xe4f   :  { %v3353_v61 = vadd.f32 %v1285_v60, %v1277_v59 }
 0xe51   :  { %2659 = vtanh.f32 %v3353_v61 }
 0xe56   :  { %v2658_v62 = vpop.eup %2657 }
 0xe57   :  { %1186 = vrot.lane.b32.xlu0 %v2658_v62, %s2940_s8 }
 0xe5b   :  { %v2660_v63 = vpop.eup %2659 }
 0xe5c   :  { %1290 = vrot.lane.b32.xlu1 %v2660_v63, %s2940_s8 }
 0xec9   :  { %v1187_v1 = vpop.permute.xlu0 %1186 }
 0xeca   :  { %v3358_v2 = vmul.f32 %v2654_v49, %v1187_v1 }
 0xecc   :  { %v1295_v3 = vpack.c.bf16 %v3358_v2, %v3358_v2 }
 0xece   :  { %1297 = vrot.lane.b32.xlu0 %v1295_v3, %s2933_s26  ;;  %v1291_v4 = vpop.permute.xlu1 %1290 }
 0xecf   :  { %v1293_v7 = vmul.f32 %v2656_v52, %v1291_v4 }
 0xed1   :  { %v1294_v8 = vpack.c.bf16 %v1293_v7, %v1293_v7 }
 0xed3   :  { %1343 = vrot.lane.b32.xlu1 %v1294_v8, %s2933_s26 }
 0xf40   :  { %v1298_v9 = vpop.permute.xlu0 %1297 }
 0xf41   :  { %2471 = vmatmul.mubr.msk.bf16.vlgmr.msra.gmra.mrb[28].mxu1 %vm303_vm3, %v1298_v9 }
 0xf42   :  { %2483 = vmatpush3.bf16.msra.mxu1 %v3131_v5  ;;  %2486 = vmatprep.mubr.msk.bf16.mxu1 %vm2943_vm0, %v2942_v0 }
 0xf43   :  { %2484 = vmatprep.subr.bf16.mxu1 %v2942_v0 }
 0xf45   :  { %v1344_v10 = vpop.permute.xlu1 %1343 }
 0xf46   :  { %2485 = vmatpush3.bf16.msra.mxu1 %v3138_v6  ;;  %2479 = vmatmul.mubr.msk.bf16.vlgmr.msra.gmra.mrb[32].mxu0 %vm303_vm3, %v1344_v10 }
 0xf47   :  { %2498 = vmatprep.subr.bf16.mxu1 %v2942_v0  ;;  %2491 = vmatpush3.bf16.msra.mxu0 %v3163_v40 }
 0xf48   :  { %2492 = vmatprep.subr.bf16.mxu0 %v2942_v0  ;;  %2494 = vmatprep.mubr.msk.bf16.mxu0 %vm2943_vm0, %v2942_v0 }
 0xf49   :  { %2487 = vmatmul.mubr.msk.bf16.vlgmr.msra.gmra.mrb[32].mxu1 %vm303_vm3, %v1344_v10 }
 0xf4a   :  { %2499 = vmatpush3.bf16.msra.mxu1 %v3168_v41  ;;  %2502 = vmatprep.mubr.msk.bf16.mxu1 %vm2943_vm0, %v2942_v0 }
 0xf4b   :  { %2500 = vmatprep.subr.bf16.mxu1 %v2942_v0  ;;  %2493 = vmatpush3.bf16.msra.mxu0 %v3171_v42 }
 0xf4c   :  { %2506 = vmatprep.subr.bf16.mxu0 %v2942_v0 }
 0xf4e   :  { %2501 = vmatpush3.bf16.msra.mxu1 %v3178_v44 }
 0xf4f   :  { %2514 = vmatprep.subr.bf16.mxu1 %v2942_v0 }
0x1014   :  { %v1336_v11 = vpop.f32.mrb[28].mxu1 }
0x1015   :  { %v2472_v12 = vpop.f32.mrb[29].mxu1 }
0x1016   :  { %v1339_v14 = vpop.f32.mrb[30].mxu1 }
0x1017   :  { %v2473_v15 = vpop.f32.mrb[31].mxu1 }
0x1019   :  { %v1382_v16 = vpop.f32.mrb[32].mxu0 }
0x101a   :  { %v1383_v17 = vadd.f32 %v1382_v16, %v1336_v11  ;;  %v2480_v18 = vpop.f32.mrb[33].mxu0 }
0x101b   :  { %v1385_v19 = vpop.f32.mrb[34].mxu0 }
0x101c   :  { %v1388_v20 = vadd.f32 %v3208_v55, %v1383_v17  ;;  %v1486_v22 = vpop.f32.mrb[32].mxu1  ;;  %v2481_v24 = vpop.f32.mrb[35].mxu0 }
0x101d   :  { %v1492_v25 = vadd.f32 %v1486_v22, %v3151_v23  ;;  %v2488_v26 = vpop.f32.mrb[33].mxu1 }
0x101e   :  { %2661 = vtanh.f32 %v1388_v20  ;;  %v1489_v27 = vpop.f32.mrb[34].mxu1  ;;  %v2251_v31 = vmul.f32 -1.442695, %v1388_v20 }
0x101f   :  { %2663 = vtanh.f32 %v1492_v25  ;;  %v2489_v28 = vpop.f32.mrb[35].mxu1  ;;  %v2253_v32 = vmul.f32 -1.442695, %v1492_v25 }
0x1020   :  { %2665 = vpow2.f32 %v2251_v31 }
0x1021   :  { %2667 = vpow2.f32 %v2253_v32 }
0x1028   :  { %v2662_v29 = vpop.eup %2661 }
0x1029   :  { %v2664_v30 = vpop.eup %2663  ;;  %1398 = vrot.lane.b32.xlu0 %v2662_v29, %s2940_s8 }
0x102a   :  { %1502 = vrot.lane.b32.xlu1 %v2664_v30, %s2940_s8  ;;  %v2666_v33 = vpop.eup %2665 }
0x102b   :  { %v2668_v34 = vpop.eup %2667  ;;  %v1392_v36 = vadd.f32 1.0, %v2666_v33 }
0x102c   :  { %v1496_v37 = vadd.f32 1.0, %v2668_v34 }
0x102d   :  { %2669 = vrcp.f32 %v1392_v36 }
0x102e   :  { %2671 = vrcp.f32 %v1496_v37 }
0x1037   :  { %v2670_v38 = vpop.eup %2669 }
0x1038   :  { %v2672_v43 = vpop.eup %2671  ;;  %v1396_v48 = vmul.f32 %v2670_v38, %v3349_v58 }
0x1039   :  { %v1500_v49 = vmul.f32 %v2672_v43, %v3353_v61 }
0x109b   :  { %v1399_v39 = vpop.permute.xlu0 %1398 }
0x109c   :  { %v1503_v45 = vpop.permute.xlu1 %1502  ;;  %v1401_v46 = vmul.f32 %v2670_v38, %v1399_v39 }
0x109d   :  { %v1505_v47 = vmul.f32 %v2672_v43, %v1503_v45 }
0x109e   :  { %1403 = vrot.lane.b32.xlu0 %v1401_v46, %s2940_s8 }
0x109f   :  { %1507 = vrot.lane.b32.xlu1 %v1505_v47, %s2940_s8 }
0x1110   :  { %v1404_v50 = vpop.permute.xlu0 %1403 }
0x1111   :  { %v1508_v51 = vpop.permute.xlu1 %1507  ;;  %v3393_v52 = vadd.f32 %v1404_v50, %v1396_v48 }
0x1112   :  { %v3395_v53 = vadd.f32 %v1508_v51, %v1500_v49 }
0x1113   :  { %2673 = vtanh.f32 %v3393_v52 }
0x1114   :  { %2675 = vtanh.f32 %v3395_v53 }
0x111d   :  { %v2674_v54 = vpop.eup %2673 }
0x111e   :  { %v2676_v56 = vpop.eup %2675  ;;  %1409 = vrot.lane.b32.xlu0 %v2674_v54, %s2940_s8 }
0x111f   :  { %1513 = vrot.lane.b32.xlu1 %v2676_v56, %s2940_s8  ;;  %v2717_v56 = vld [vmem:[#allocation9] sm:$0xff]  }
0x1190   :  { %v1410_v57 = vpop.permute.xlu0 %1409 }
0x1191   :  { %v1514_v58 = vpop.permute.xlu1 %1513  ;;  %v3401_v59 = vmul.f32 %v2670_v38, %v1410_v57 }
0x1192   :  { %v1516_v60 = vmul.f32 %v2672_v43, %v1514_v58  ;;  %v2718_v58 = vld [vmem:[#allocation9 + $0x8] sm:$0xff]  }
0x1193   :  { %v1518_v61 = vpack.c.bf16 %v3401_v59, %v3401_v59 }
0x1194   :  { %v1517_v62 = vpack.c.bf16 %v1516_v60, %v1516_v60 }
0x1195   :  { %1520 = vrot.lane.b32.xlu0 %v1518_v61, %s2933_s26 }
0x1196   :  { %1566 = vrot.lane.b32.xlu1 %v1517_v62, %s2933_s26 }
0x1207   :  { %v1521_v63 = vpop.permute.xlu0 %1520 }
0x1208   :  { %v1567_v1 = vpop.permute.xlu1 %1566  ;;  %2495 = vmatmul.mubr.msk.bf16.vlgmr.msra.gmra.mrb[36].mxu0 %vm303_vm3, %v1521_v63 }
0x1209   :  { %2503 = vmatmul.mubr.msk.bf16.vlgmr.msra.gmra.mrb[36].mxu1 %vm303_vm3, %v1567_v1  ;;  %2507 = vmatpush3.bf16.msra.mxu0 %v3131_v5 }
0x120a   :  { %2508 = vmatprep.subr.bf16.mxu0 %v2942_v0  ;;  %2510 = vmatprep.mubr.msk.bf16.mxu0 %vm2943_vm0, %v2942_v0 }
0x120b   :  { %2515 = vmatpush3.bf16.msra.mxu1 %v3163_v40  ;;  %2518 = vmatprep.mubr.msk.bf16.mxu1 %vm2943_vm0, %v2942_v0 }
0x120c   :  { %2516 = vmatprep.subr.bf16.mxu1 %v2942_v0 }
0x120d   :  { %2509 = vmatpush3.bf16.msra.mxu0 %v3138_v6 }
0x120e   :  { %2522 = vmatprep.subr.bf16.mxu0 %v2942_v0 }
0x120f   :  { %2517 = vmatpush3.bf16.msra.mxu1 %v3171_v42 }
0x1210   :  { %2511 = vmatmul.mubr.msk.bf16.vlgmr.msra.gmra.mrb[40].mxu0 %vm303_vm3, %v1567_v1  ;;  %2530 = vmatprep.subr.bf16.mxu1 %v2942_v0 }
0x1211   :  { %2523 = vmatpush3.bf16.msra.mxu0 %v3168_v41  ;;  %2526 = vmatprep.mubr.msk.bf16.mxu0 %vm2943_vm0, %v2942_v0 }
0x1212   :  { %2524 = vmatprep.subr.bf16.mxu0 %v2942_v0 }
0x1215   :  { %2525 = vmatpush3.bf16.msra.mxu0 %v3178_v44 }
0x1216   :  { %2538 = vmatprep.subr.bf16.mxu0 %v2942_v0 }
0x12db   :  { %v1559_v5 = vpop.f32.mrb[36].mxu0 }
0x12dc   :  { %v1605_v6 = vpop.f32.mrb[36].mxu1  ;;  %v2496_v3 = vpop.f32.mrb[37].mxu0 }
0x12dd   :  { %v1606_v4 = vadd.f32 %v1605_v6, %v1559_v5  ;;  %v2504_v7 = vpop.f32.mrb[37].mxu1  ;;  %v1562_v8 = vpop.f32.mrb[38].mxu0 }
0x12de   :  { %v1608_v9 = vpop.f32.mrb[38].mxu1  ;;  %v2497_v10 = vpop.f32.mrb[39].mxu0 }
0x12df   :  { %v1611_v11 = vadd.f32 %v3208_v55, %v1606_v4  ;;  %v2505_v12 = vpop.f32.mrb[39].mxu1 }
0x12e1   :  { %2677 = vtanh.f32 %v1611_v11  ;;  %v2256_v22 = vmul.f32 -1.442695, %v1611_v11 }
0x12e3   :  { %v1709_v14 = vpop.f32.mrb[40].mxu0 }
0x12e4   :  { %v1715_v15 = vadd.f32 %v1709_v14, %v3151_v23  ;;  %v2512_v16 = vpop.f32.mrb[41].mxu0 }
0x12e5   :  { %v1712_v17 = vpop.f32.mrb[42].mxu0 }
0x12e6   :  { %2679 = vtanh.f32 %v1715_v15  ;;  %v2513_v18 = vpop.f32.mrb[43].mxu0  ;;  %v2258_v24 = vmul.f32 -1.442695, %v1715_v15 }
0x12e7   :  { %2681 = vpow2.f32 %v2256_v22 }
0x12e8   :  { %2683 = vpow2.f32 %v2258_v24 }
0x12eb   :  { %v2678_v19 = vpop.eup %2677 }
0x12ec   :  { %1621 = vrot.lane.b32.xlu0 %v2678_v19, %s2940_s8 }
0x12f0   :  { %v2680_v20 = vpop.eup %2679 }
0x12f1   :  { %1725 = vrot.lane.b32.xlu1 %v2680_v20, %s2940_s8  ;;  %v2682_v25 = vpop.eup %2681 }
0x12f2   :  { %v1615_v26 = vadd.f32 1.0, %v2682_v25  ;;  %v2684_v27 = vpop.eup %2683 }
0x12f3   :  { %v1719_v28 = vadd.f32 1.0, %v2684_v27 }
0x12f4   :  { %2685 = vrcp.f32 %v1615_v26 }
0x12f5   :  { %2687 = vrcp.f32 %v1719_v28 }
0x12fe   :  { %v2686_v29 = vpop.eup %2685 }
0x12ff   :  { %v2688_v32 = vpop.eup %2687  ;;  %v1619_v36 = vmul.f32 %v2686_v29, %v3393_v52 }
0x1300   :  { %v1723_v39 = vmul.f32 %v2688_v32, %v3395_v53 }
0x135e   :  { %v1622_v30 = vpop.permute.xlu0 %1621 }
0x135f   :  { %v1624_v31 = vmul.f32 %v2686_v29, %v1622_v30 }
0x1361   :  { %1626 = vrot.lane.b32.xlu0 %v1624_v31, %s2940_s8 }
0x1363   :  { %v1726_v33 = vpop.permute.xlu1 %1725 }
0x1364   :  { %v1728_v34 = vmul.f32 %v2688_v32, %v1726_v33 }
0x1366   :  { %1730 = vrot.lane.b32.xlu1 %v1728_v34, %s2940_s8 }
0x13d3   :  { %v1627_v37 = vpop.permute.xlu0 %1626 }
0x13d4   :  { %v3435_v38 = vadd.f32 %v1627_v37, %v1619_v36 }
0x13d6   :  { %2689 = vtanh.f32 %v3435_v38 }
0x13d8   :  { %v1731_v43 = vpop.permute.xlu1 %1730 }
0x13d9   :  { %v3439_v45 = vadd.f32 %v1731_v43, %v1723_v39 }
0x13db   :  { %2691 = vtanh.f32 %v3439_v45 }
0x13e0   :  { %v2690_v46 = vpop.eup %2689 }
0x13e1   :  { %1632 = vrot.lane.b32.xlu0 %v2690_v46, %s2940_s8 }
0x13e5   :  { %v2692_v47 = vpop.eup %2691 }
0x13e6   :  { %1736 = vrot.lane.b32.xlu1 %v2692_v47, %s2940_s8 }
0x1453   :  { %v1633_v48 = vpop.permute.xlu0 %1632 }
0x1454   :  { %v3444_v49 = vmul.f32 %v2686_v29, %v1633_v48 }
0x1456   :  { %v1741_v50 = vpack.c.bf16 %v3444_v49, %v3444_v49 }
0x1458   :  { %1743 = vrot.lane.b32.xlu0 %v1741_v50, %s2933_s26  ;;  %v1737_v51 = vpop.permute.xlu1 %1736 }
0x1459   :  { %v1739_v52 = vmul.f32 %v2688_v32, %v1737_v51 }
0x145b   :  { %v1740_v53 = vpack.c.bf16 %v1739_v52, %v1739_v52 }
0x145d   :  { %1789 = vrot.lane.b32.xlu1 %v1740_v53, %s2933_s26 }
0x14ca   :  { %v1744_v54 = vpop.permute.xlu0 %1743 }
0x14cb   :  { %2519 = vmatmul.mubr.msk.bf16.vlgmr.msra.gmra.mrb[40].mxu1 %vm303_vm3, %v1744_v54  ;;  %v2719_v54 = vld [vmem:[#allocation14] ss:$0 sm:$0xff] }
0x14cc   :  { %2531 = vmatpush3.bf16.msra.mxu1 %v2717_v56  ;;  %2534 = vmatprep.mubr.msk.bf16.mxu1 %vm2943_vm0, %v2942_v0 }
0x14cd   :  { %2532 = vmatprep.subr.bf16.mxu1 %v2942_v0 }
0x14cf   :  { %v1790_v57 = vpop.permute.xlu1 %1789 }
0x14d0   :  { %2533 = vmatpush3.bf16.msra.mxu1 %v2718_v58  ;;  %2527 = vmatmul.mubr.msk.bf16.vlgmr.msra.gmra.mrb[44].mxu0 %vm303_vm3, %v1790_v57 }
0x14d1   :  { %2546 = vmatprep.subr.bf16.mxu1 %v2942_v0  ;;  %2539 = vmatpush3.bf16.msra.mxu0 %v3163_v40 }
0x14d2   :  { %2540 = vmatprep.subr.bf16.mxu0 %v2942_v0  ;;  %2542 = vmatprep.mubr.msk.bf16.mxu0 %vm2943_vm0, %v2942_v0 }
0x14d3   :  { %2535 = vmatmul.mubr.msk.bf16.vlgmr.msra.gmra.mrb[44].mxu1 %vm303_vm3, %v1790_v57 }
0x14d4   :  { %2547 = vmatpush3.bf16.msra.mxu1 %v3168_v41  ;;  %2550 = vmatprep.mubr.msk.bf16.mxu1 %vm2943_vm0, %v2942_v0 }
0x14d5   :  { %2548 = vmatprep.subr.bf16.mxu1 %v2942_v0  ;;  %2541 = vmatpush3.bf16.msra.mxu0 %v3171_v42 }
0x14d6   :  { %2554 = vmatprep.subr.bf16.mxu0 %v2942_v0 }
0x14d8   :  { %2549 = vmatpush3.bf16.msra.mxu1 %v3178_v44 }
0x159e   :  { %v1782_v40 = vpop.f32.mrb[40].mxu1 }
0x159f   :  { %v2520_v60 = vpop.f32.mrb[41].mxu1 }
0x15a0   :  { %v1785_v61 = vpop.f32.mrb[42].mxu1 }
0x15a1   :  { %v2521_v62 = vpop.f32.mrb[43].mxu1  ;;  %v2944_v61 = vmov 1966171168  }
0x15a2   :  { %v522_v62 = vunpack.c.l.s4 %v2944_v61 }
0x15a3   :  { %v1828_v63 = vpop.f32.mrb[44].mxu0 }
0x15a4   :  { %v1829_v1 = vadd.f32 %v1828_v63, %v1782_v40  ;;  %v2528_v5 = vpop.f32.mrb[45].mxu0  ;;  %v524_v63 = vlaneseq }
0x15a5   :  { %v1831_v6 = vpop.f32.mrb[46].mxu0  ;;  %v523_v5 = vunpack.c.0.s8 %v522_v62  ;;  %v2587_v62 = vld [vmem:[%s3612_s11] sm:$0xff]  }
0x15a6   :  { %v1834_v41 = vadd.f32 %v3208_v55, %v1829_v1  ;;  %v1932_v3 = vpop.f32.mrb[44].mxu1  ;;  %v2529_v4 = vpop.f32.mrb[47].mxu0  ;;  %v525_v6 = vshrl.u32 %v524_v63, 7 }
0x15a7   :  { %v1938_v7 = vadd.f32 %v1932_v3, %v3151_v23  ;;  %v2536_v8 = vpop.f32.mrb[45].mxu1 }
0x15a8   :  { %2693 = vtanh.f32 %v1834_v41  ;;  %v1935_v42 = vpop.f32.mrb[46].mxu1  ;;  %v2261_v11 = vmul.f32 -1.442695, %v1834_v41  ;;  %v3488_v41 = vsub.s32 %v523_v5, %v525_v6 }
0x15a9   :  { %2695 = vtanh.f32 %v1938_v7  ;;  %v2537_v9 = vpop.f32.mrb[47].mxu1  ;;  %v2263_v12 = vmul.f32 -1.442695, %v1938_v7 }
0x15aa   :  { %2697 = vpow2.f32 %v2261_v11  ;;  %v527_v3 = vrot.slane %v3229_v35, %v3488_v41  ;;  %v751_v8 = vrot.slane %v3272_v21, %v3488_v41  ;;  %v1197_v21 = vrot.slane %v3358_v2, %v3488_v41 }
0x15ab   :  { %2699 = vpow2.f32 %v2263_v12 }
0x15ac   :  { %v535_v9 = vrot.slane %v527_v3, %v3488_v41  ;;  %v759_v35 = vrot.slane %v751_v8, %v3488_v41 }
0x15b2   :  { %v2694_v44 = vpop.eup %2693 }
0x15b3   :  { %v2696_v10 = vpop.eup %2695  ;;  %1844 = vrot.lane.b32.xlu0 %v2694_v44, %s2940_s8  ;;  %v3498_v44 = vsub.s32 0, %v525_v6 }
0x15b4   :  { %1948 = vrot.lane.b32.xlu1 %v2696_v10, %s2940_s8  ;;  %v2698_v55 = vpop.eup %2697  ;;  %v974_v10 = vrot.slane %v3315_v13, %v3488_v41 }
0x15b5   :  { %v2700_v14 = vpop.eup %2699  ;;  %v1838_v15 = vadd.f32 1.0, %v2698_v55  ;;  %v546_v11 = vrot.slane %v535_v9, %v3498_v44  ;;  %v770_v12 = vrot.slane %v759_v35, %v3498_v44 }
0x15b6   :  { %v1942_v16 = vadd.f32 1.0, %v2700_v14  ;;  %v982_v55 = vrot.slane %v974_v10, %v3488_v41  ;;  %v1420_v14 = vrot.slane %v3401_v59, %v3488_v41 }
0x15b7   :  { %2701 = vrcp.f32 %v1838_v15  ;;  %v1205_v15 = vrot.slane %v1197_v21, %v3488_v41 }
0x15b8   :  { %2703 = vrcp.f32 %v1942_v16  ;;  %v993_v13 = vrot.slane %v982_v55, %v3498_v44  ;;  %v1643_v16 = vrot.slane %v3444_v49, %v3488_v41 }
0x15b9   :  { %v1216_v2 = vrot.slane %v1205_v15, %v3498_v44  ;;  %v2267_v15 = vld [vmem:[%s3613_s12] ss:$0 sm:$0xff] }
0x15ba   :  { %v1651_v59 = vrot.slane %v1643_v16, %v3488_v41 }
0x15c1   :  { %v2702_v23 = vpop.eup %2701 }
0x15c2   :  { %v2704_v18 = vpop.eup %2703  ;;  %v1842_v24 = vmul.f32 %v2702_v23, %v3435_v38 }
0x15c3   :  { %v1946_v25 = vmul.f32 %v2704_v18, %v3439_v45 }
0x1625   :  { %v1845_v17 = vpop.permute.xlu0 %1844 }
0x1626   :  { %v1949_v19 = vpop.permute.xlu1 %1948  ;;  %v1847_v20 = vmul.f32 %v2702_v23, %v1845_v17 }
0x1627   :  { %v1951_v22 = vmul.f32 %v2704_v18, %v1949_v19  ;;  %v1662_v19 = vrot.slane %v1651_v59, %v3498_v44 }
0x1628   :  { %1849 = vrot.lane.b32.xlu0 %v1847_v20, %s2940_s8 }
0x1629   :  { %1953 = vrot.lane.b32.xlu1 %v1951_v22, %s2940_s8 }
0x169a   :  { %v1850_v26 = vpop.permute.xlu0 %1849 }
0x169b   :  { %v1954_v27 = vpop.permute.xlu1 %1953  ;;  %v3476_v28 = vadd.f32 %v1850_v26, %v1842_v24 }
0x169c   :  { %v1956_v29 = vadd.f32 %v1954_v27, %v1946_v25  ;;  %v528_v27 = vcombine.high %v527_v3, %v527_v3 }
0x169d   :  { %2705 = vtanh.f32 %v3476_v28 }
0x169e   :  { %2707 = vtanh.f32 %v1956_v29 }
0x16a7   :  { %v2706_v30 = vpop.eup %2705 }
0x16a8   :  { %v2708_v31 = vpop.eup %2707  ;;  %1855 = vrot.lane.b32.xlu0 %v2706_v30, %s2940_s8  ;;  %v752_v30 = vcombine.high %v751_v8, %v751_v8 }
0x16a9   :  { %1959 = vrot.lane.b32.xlu1 %v2708_v31, %s2940_s8 }
0x171a   :  { %v1856_v32 = vpop.permute.xlu0 %1855 }
0x171b   :  { %v1960_v33 = vpop.permute.xlu1 %1959  ;;  %v1858_v34 = vmul.f32 %v2702_v23, %v1856_v32  ;;  %v1428_v23 = vrot.slane %v1420_v14, %v3488_v41  ;;  %v542_v32 = vrot.slane %v528_v27, %v3488_v41 }
0x171c   :  { %v1962_v36 = vmul.f32 %v2704_v18, %v1960_v33 }
0x171d   :  { %v1964_v37 = vpack.c.bf16 %v1858_v34, %v1858_v34  ;;  %v1866_v17 = vrot.slane %v1858_v34, %v3488_v41  ;;  %v1439_v18 = vrot.slane %v1428_v23, %v3498_v44 }
0x171e   :  { %v1963_v38 = vpack.c.bf16 %v1962_v36, %v1962_v36  ;;  %v550_v36 = vrot.slane %v542_v32, %v3498_v44 }
0x171f   :  { %1966 = vrot.lane.b32.xlu0 %v1964_v37, %s2933_s26  ;;  %v1874_v20 = vrot.slane %v1866_v17, %v3488_v41  ;;  %v766_v37 = vrot.slane %v752_v30, %v3488_v41 }
0x1720   :  { %2012 = vrot.lane.b32.xlu1 %v1963_v38, %s2933_s26  ;;  %v1198_v38 = vcombine.high %v1197_v21, %v1197_v21 }
0x1721   :  { %v1885_v49 = vrot.slane %v1874_v20, %v3498_v44 }
0x1791   :  { %v1967_v39 = vpop.permute.xlu0 %1966 }
0x1792   :  { %v2013_v43 = vpop.permute.xlu1 %2012  ;;  %2543 = vmatmul.mubr.msk.bf16.vlgmr.msra.gmra.mrb[48].mxu0 %vm303_vm3, %v1967_v39 }
0x1793   :  { %2551 = vmatmul.mubr.msk.bf16.vlgmr.msra.gmra.mrb[48].mxu1 %vm303_vm3, %v2013_v43  ;;  %2558 = vmatprep.mubr.msk.bf16.mxu0 %vm2943_vm0, %v2942_v0  ;;  %v774_v43 = vrot.slane %v766_v37, %v3498_v44 }
0x1794   :  { %2555 = vmatpush3.bf16.msra.mxu0 %v2587_v62 }
0x1795   :  { %2556 = vmatprep.subr.bf16.mxu0 %v2942_v0 }
0x1865   :  { %v2005_v45 = vpop.f32.mrb[48].mxu0 }
0x1866   :  { %v2051_v46 = vpop.f32.mrb[48].mxu1  ;;  %v2544_v47 = vpop.f32.mrb[49].mxu0 }
0x1867   :  { %v2052_v48 = vadd.f32 %v2051_v46, %v2005_v45  ;;  %v2552_v50 = vpop.f32.mrb[49].mxu1  ;;  %v2008_v51 = vpop.f32.mrb[50].mxu0  ;;  %v1421_v46 = vcombine.high %v1420_v14, %v1420_v14 }
0x1868   :  { %v2054_v52 = vpop.f32.mrb[50].mxu1  ;;  %v2545_v53 = vpop.f32.mrb[51].mxu0  ;;  %v1212_v50 = vrot.slane %v1198_v38, %v3488_v41  ;;  %v1644_v51 = vcombine.high %v1643_v16, %v1643_v16 }
0x1869   :  { %v2057_v56 = vadd.f32 %v2719_v54, %v2052_v48  ;;  %v2553_v57 = vpop.f32.mrb[51].mxu1  ;;  %v1435_v54 = vrot.slane %v1421_v46, %v3488_v41 }
0x186a   :  { %v1220_v53 = vrot.slane %v1212_v50, %v3498_v44 }
0x186b   :  { %2709 = vtanh.f32 %v2057_v56  ;;  %v2266_v40 = vmul.f32 -1.442695, %v2057_v56  ;;  %v1867_v56 = vcombine.high %v1866_v17, %v1866_v17  ;;  %v1443_v57 = vrot.slane %v1435_v54, %v3498_v44 }
0x186d   :  { %2711 = vpow2.f32 %v2266_v40 }
0x1875   :  { %v2710_v58 = vpop.eup %2709 }
0x1876   :  { %2067 = vrot.lane.b32.xlu0 %v2710_v58, %s2940_s8  ;;  %v1658_v58 = vrot.slane %v1644_v51, %v3488_v41 }
0x1877   :  { %v2712_v60 = vpop.eup %2711 }
0x1878   :  { %v2061_v1 = vadd.f32 1.0, %v2712_v60  ;;  %v1666_v40 = vrot.slane %v1658_v58, %v3498_v44  ;;  %v1881_v60 = vrot.slane %v1867_v56, %v3488_v41 }
0x187a   :  { %2713 = vrcp.f32 %v2061_v1  ;;  %v1889_v61 = vrot.slane %v1881_v60, %v3498_v44  ;;  %v2588_v1 = vld [vmem:[%s3612_s11 + $0x8] sm:$0xff]  }
0x187b   :  { %2557 = vmatpush3.bf16.msra.mxu0 %v2588_v1 }
0x1884   :  { %v3492_v4 = vpop.eup %2713 }
0x1885   :  { %v2065_v22 = vmul.f32 %v3492_v4, %v3476_v28  ;;  %v975_v28 = vcombine.high %v974_v10, %v974_v10 }
0x1887   :  { %v989_v45 = vrot.slane %v975_v28, %v3488_v41 }
0x1889   :  { %v997_v48 = vrot.slane %v989_v45, %v3498_v44 }
0x18e8   :  { %v2068_v7 = vpop.permute.xlu0 %2067 }
0x18e9   :  { %v2070_v42 = vmul.f32 %v3492_v4, %v2068_v7 }
0x18eb   :  { %2072 = vrot.lane.b32.xlu1 %v2070_v42, %s2940_s8 }
0x18ef   :  { %551 = vrot.lane.b32.xlu1 %v546_v11, %s2933_s26 }
0x18f3   :  { %775 = vrot.lane.b32.xlu1 %v770_v12, %s2933_s26 }
0x18f7   :  { %998 = vrot.lane.b32.xlu1 %v993_v13, %s2933_s26 }
0x18fb   :  { %1221 = vrot.lane.b32.xlu1 %v1216_v2, %s2933_s26 }
0x18ff   :  { %1444 = vrot.lane.b32.xlu1 %v1439_v18, %s2933_s26 }
0x1903   :  { %1667 = vrot.lane.b32.xlu1 %v1662_v19, %s2933_s26 }
0x1907   :  { %1890 = vrot.lane.b32.xlu1 %v1885_v49, %s2933_s26 }
0x195d   :  { %v2073_v24 = vpop.permute.xlu1 %2072 }
0x195e   :  { %v2075_v25 = vadd.f32 %v2073_v24, %v2065_v22 }
0x1960   :  { %2715 = vtanh.f32 %v2075_v25 }
0x1961   :  { %v552_v26 = vpop.permute.xlu1 %551 }
0x1962   :  { %558 = vst.msk [vmem:[#allocation2] sm:$0x1] %vm557_vm5, %v552_v26 }
0x1965   :  { %v776_v29 = vpop.permute.xlu1 %775 }
0x1966   :  { %781 = vst.msk [vmem:[#allocation2 + $0x1] sm:$0x1] %vm557_vm5, %v776_v29 }
0x1969   :  { %v999_v31 = vpop.permute.xlu1 %998 }
0x196a   :  { %v2716_v33 = vpop.eup %2715  ;;  %1004 = vst.msk [vmem:[#allocation2 + $0x2] sm:$0x1] %vm557_vm5, %v999_v31 }
0x196b   :  { %2078 = vrot.lane.b32.xlu0 %v2716_v33, %s2940_s8 }
0x196d   :  { %v1222_v34 = vpop.permute.xlu1 %1221 }
0x196e   :  { %1227 = vst.msk [vmem:[#allocation2 + $0x3] sm:$0x1] %vm557_vm5, %v1222_v34 }
0x196f   :  { %553 = vrot.lane.b32.xlu0 %v550_v36, %s2933_s26 }
0x1971   :  { %v1445_v39 = vpop.permute.xlu1 %1444 }
0x1972   :  { %1450 = vst.msk [vmem:[#allocation2 + $0x4] sm:$0x1] %vm557_vm5, %v1445_v39 }
0x1973   :  { %777 = vrot.lane.b32.xlu0 %v774_v43, %s2933_s26 }
0x1975   :  { %v1668_v47 = vpop.permute.xlu1 %1667 }
0x1976   :  { %1673 = vst.msk [vmem:[#allocation2 + $0x5] sm:$0x1] %vm557_vm5, %v1668_v47 }
0x1977   :  { %1000 = vrot.lane.b32.xlu0 %v997_v48, %s2933_s26 }
0x1979   :  { %v1891_v52 = vpop.permute.xlu1 %1890 }
0x197a   :  { %1896 = vst.msk [vmem:[#allocation2 + $0x6] sm:$0x1] %vm557_vm5, %v1891_v52 }
0x197b   :  { %1223 = vrot.lane.b32.xlu0 %v1220_v53, %s2933_s26 }
0x197f   :  { %1446 = vrot.lane.b32.xlu0 %v1443_v57, %s2933_s26 }
0x1983   :  { %1669 = vrot.lane.b32.xlu0 %v1666_v40, %s2933_s26 }
0x1987   :  { %1892 = vrot.lane.b32.xlu0 %v1889_v61, %s2933_s26 }
0x19dd   :  { %v2079_v63 = vpop.permute.xlu0 %2078 }
0x19de   :  { %v2081_v5 = vmul.f32 %v3492_v4, %v2079_v63 }
0x19e0   :  { %v2089_v6 = vrot.slane %v2081_v5, %v3488_v41 }
0x19e1   :  { %v554_v3 = vpop.permute.xlu0 %553 }
0x19e2   :  { %v2090_v7 = vcombine.high %v2089_v6, %v2089_v6  ;;  %559 = vst.msk [vmem:[#allocation2 + $0x8] sm:$0x1] %vm557_vm5, %v554_v3  ;;  %v2097_v8 = vrot.slane %v2089_v6, %v3488_v41 }
0x19e4   :  { %v2108_v42 = vrot.slane %v2097_v8, %v3498_v44  ;;  %v2104_v9 = vrot.slane %v2090_v7, %v3488_v41 }
0x19e5   :  { %v778_v10 = vpop.permute.xlu0 %777 }
0x19e6   :  { %782 = vst.msk [vmem:[#allocation2 + $0x9] sm:$0x1] %vm557_vm5, %v778_v10  ;;  %2113 = vrot.lane.b32.xlu1 %v2108_v42, %s2933_s26  ;;  %v2112_v0 = vrot.slane %v2104_v9, %v3498_v44 }
0x19e8   :  { %2115 = vrot.lane.b32.xlu0 %v2112_v0, %s2933_s26 }
0x19e9   :  { %v1001_v4 = vpop.permute.xlu0 %1000 }
0x19ea   :  { %1005 = vst.msk [vmem:[#allocation2 + $0xa] sm:$0x1] %vm557_vm5, %v1001_v4 }
0x19ed   :  { %v1224_v11 = vpop.permute.xlu0 %1223 }
0x19ee   :  { %1228 = vst.msk [vmem:[#allocation2 + $0xb] sm:$0x1] %vm557_vm5, %v1224_v11 }
0x19f1   :  { %v1447_v35 = vpop.permute.xlu0 %1446 }
0x19f2   :  { %1451 = vst.msk [vmem:[#allocation2 + $0xc] sm:$0x1] %vm557_vm5, %v1447_v35 }
0x19f5   :  { %v1670_v21 = vpop.permute.xlu0 %1669 }
0x19f6   :  { %1674 = vst.msk [vmem:[#allocation2 + $0xd] sm:$0x1] %vm557_vm5, %v1670_v21 }
0x19f9   :  { %v1893_v41 = vpop.permute.xlu0 %1892 }
0x19fa   :  { %1897 = vst.msk [vmem:[#allocation2 + $0xe] sm:$0x1] %vm557_vm5, %v1893_v41 }
0x1a58   :  { %v2114_v12 = vpop.permute.xlu1 %2113 }
0x1a59   :  { %2119 = vst.msk [vmem:[#allocation2 + $0x7] sm:$0x1] %vm557_vm5, %v2114_v12 }
0x1a5a   :  { %v2116_v44 = vpop.permute.xlu0 %2115 }
0x1a5b   :  { %2120 = vst.msk [vmem:[#allocation2 + $0xf] sm:$0x1] %vm557_vm5, %v2116_v44 }
0x1a60   :  { %v2121_v55 = vld [vmem:[#allocation2] sm:$0xff] }
0x1a62   :  { %v2122_v14 = vld [vmem:[#allocation2 + $0x8] sm:$0xff] }
0x1a63   :  { %v2123_v13 = vpack.c.bf16 %v2122_v14, %v2121_v55 }
0x1a65   :  { %2559 = vmatmul.mubr.msk.bf16.vlgmr.msra.gmra.mrb[52].mxu0 %vm303_vm3, %v2123_v13 }
0x1b38   :  { %v2184_v16 = vpop.f32.mrb[52].mxu0 }
0x1b39   :  { %v2185_v2 = vadd.f32 %v2267_v15, %v2184_v16  ;;  %v2560_v23 = vpop.f32.mrb[53].mxu0 }
0x1b3a   :  { %v2187_v17 = vpop.f32.mrb[54].mxu0 }
0x1b3b   :  { %2191 = vst [vmem:[#allocation17] sm:$0xff] %v2185_v2  ;;  %v2188_v18 = vadd.f32 %v2267_v15, %v2187_v17  ;;  %v2561_v59 = vpop.f32.mrb[55].mxu0 }
0x1b3d   :  { %2192 = vst [vmem:[#allocation17 + $0x8] sm:$0xff] %v2188_v18 }
0x1b3e   :  { %2907 = shalt.err (!%p2904_p12)
}
0x1b3f   :  { %s2908_s4 = scalar_lea.hbm %s3614_s13, 256 }
0x1b40   :  { %p2909_p13 = scmp.ne.s32.totalorder %s3614_s13, %s2908_s4  ;;  %p2912_p0 = scmp.lt.u32.totalorder %s2908_s4, %s3614_s13 }
0x1b42   :  { %p2914_p1 = pnand %p2912_p0, %p2909_p13 }
0x1b44   :  { %2917 = shalt.err (!%p2914_p1)
}
0x1b45   :  { %s2946_s8 = smov 128   ;;  %s2947_s22 = smov 8  }
0x1b46   :  { %2204 = dma.vmem_to_hbm [thread:$0]  %s2199_s25, 256, %s3614_s13, [#allocation5], %s2946_s8, %s2946_s8, %s2947_s22  }
0x1b47   :  { %2928 = dma.done.wait [#allocation5], 256  }
0x1b48   :  { %2929 = vsyncadd [#allocation5], 4294967040 }
0x1b49   :  { %2208 = vsyncpa [#allocation4], 1 }
0x1b4a   :  { %2209 = vsyncpa [#allocation7], 1 }
0x1b4b   :  { %2210 = vsyncpa [#allocation10], 1 }
0x1b4c   :  { %2211 = vsyncpa [#allocation13], 1 }
0x1b4d   :  { %2212 = vsyncpa [#allocation16], 1 }
0x1b4e   :  { %2213 = vsyncpa [#allocation5], 1 }

</bundles_post_ra>
